<compile_context>
chip_gen: v7x
topology: tpu7x:2x2x1
jax: 0.10.0
libtpu: 0.0.40
codegen_flags: <defaults>
</compile_context>

<pallas_src>
import functools

import jax
import jax.numpy as jnp
from jax.experimental import pallas as pl
from jax.experimental.pallas import tpu as pltpu

INPUT_SIZE = 3
HIDDEN = 64
NUM_LAYERS = 3
F_PAD = 8  # layer-0 input features zero-padded to one sublane tile


def _rnn_kernel(T, B,
                x_ref,    # (T*B, F_PAD)  time-major input, features zero-padded
                w_ref,    # (F_PAD + 5H, H) packed [Wih0p; Whh0; Wih1; Whh1; Wih2; Whh2]
                p_ref,    # (8, H) packed [b0; b1; b2; wo; bo@[4,0]; zeros]
                out_ref): # (B, 1)
    H = HIDDEN
    FP = x_ref.shape[1]

    # Static row offsets into the packed weight slab (all multiples of 8).
    WIH0 = 0
    WHH0 = FP
    WIH1 = WHH0 + H
    WHH1 = WIH1 + H
    WIH2 = WHH1 + H
    WHH2 = WIH2 + H

    # Bias broadcasts hoisted (JAX does not CSE broadcast_in_dim in loops).
    b1 = jnp.broadcast_to(p_ref[1:2, :], (B, H))
    b2 = jnp.broadcast_to(p_ref[2:3, :], (B, H))

    # --- layer-0 input projection for all timesteps at once -----------------
    # No dependence on the hidden state -> off the serial critical path:
    # one (T*B, FP) @ (FP, H) matmul.
    proj = (jnp.dot(x_ref[...], w_ref[WIH0:WIH0 + FP, :],
                    preferred_element_type=jnp.float32)
            + p_ref[0:1, :])

    # --- recurrence: hidden state in vregs, static (fully unrolled) loop ----
    # Weight operands are read from the VMEM ref at each use (static slices),
    # not pinned in vregs, so regalloc keeps the skewed h0/h1/h2 chains in
    # flight instead of spilling.
    h0 = jnp.zeros((B, H), jnp.float32)
    h1 = jnp.zeros((B, H), jnp.float32)
    h2 = jnp.zeros((B, H), jnp.float32)

    for t in range(T):  # T is static -> concrete slice offsets, full unroll
        p_t = proj[t * B:(t + 1) * B, :]
        # Layer 0: only the K=64 hidden matmul remains on the serial chain.
        h0 = jnp.tanh(
            p_t + jnp.dot(h0, w_ref[WHH0:WHH0 + H, :],
                          preferred_element_type=jnp.float32))
        # Layers 1/2: split dots.  The h_old @ Whh half depends only on the
        # previous timestep, so it overlaps with the tanh of the layer below.
        h1 = jnp.tanh(
            jnp.dot(h0, w_ref[WIH1:WIH1 + H, :],
                    preferred_element_type=jnp.float32)
            + jnp.dot(h1, w_ref[WHH1:WHH1 + H, :],
                      preferred_element_type=jnp.float32)
            + b1)
        h2 = jnp.tanh(
            jnp.dot(h1, w_ref[WIH2:WIH2 + H, :],
                    preferred_element_type=jnp.float32)
            + jnp.dot(h2, w_ref[WHH2:WHH2 + H, :],
                      preferred_element_type=jnp.float32)
            + b2)

    # --- Linear(64, 1) head on the VPU/XLU (avoid N=1 MXU op) ---------------
    wo = p_ref[3:4, :]                 # (1, H)
    bo = p_ref[4:5, :][:, 0:1]         # (1, 1)
    out_ref[...] = jnp.sum(h2 * wo, axis=-1, keepdims=True) + bo


@jax.jit
def rnn_forward(x, w_slab, p_slab):
    """x: (B, T, F) float32, batch-first (PyTorch convention). Returns (B, 1)."""
    B, T, F = x.shape
    FP = w_slab.shape[0] - 5 * HIDDEN
    # Layout plumbing only (tiny, fused under jit): time-major, flatten (T,B),
    # zero-pad features to the padded row count of the weight slab.
    # (For a production caller, supply x time-major to skip this per call.)
    x_tm = jnp.transpose(x, (1, 0, 2)).reshape(T * B, F)
    x_tm = jnp.pad(x_tm, ((0, 0), (0, FP - F)))

    vmem = pl.BlockSpec(memory_space=pltpu.MemorySpace.VMEM)
    return pl.pallas_call(
        functools.partial(_rnn_kernel, T, B),
        out_shape=jax.ShapeDtypeStruct((B, 1), jnp.float32),
        in_specs=[vmem, vmem, vmem],
        out_specs=vmem,
    )(x_tm, w_slab, p_slab)


def init_params(key):
    """Deterministic PyTorch-style init: U(-1/sqrt(H), 1/sqrt(H))."""
    H, F = HIDDEN, INPUT_SIZE
    bound = 1.0 / jnp.sqrt(jnp.float32(H))
    keys = jax.random.split(key, 14)

    def u(k, shape):
        return jax.random.uniform(k, shape, jnp.float32, -bound, bound)

    params = {}
    # Layer 0: W_ih (H, F) stored transposed (F, H); W_hh stored (H, H)^T.
    params["wih0"] = u(keys[0], (F, H))
    params["whh0"] = u(keys[1], (H, H))
    params["b0"] = u(keys[2], (1, H)) + u(keys[3], (1, H))  # b_ih + b_hh fused
    params["wih1"] = u(keys[4], (H, H))
    params["whh1"] = u(keys[5], (H, H))
    params["b1"] = u(keys[6], (1, H)) + u(keys[7], (1, H))
    params["wih2"] = u(keys[8], (H, H))
    params["whh2"] = u(keys[9], (H, H))
    params["b2"] = u(keys[10], (1, H)) + u(keys[11], (1, H))
    # Linear(64, 1): weight kept in PyTorch layout (1, H), bias (1, 1).
    params["wo"] = jax.random.uniform(keys[12], (1, H), jnp.float32,
                                      -bound, bound)
    params["bo"] = jax.random.uniform(keys[13], (1, 1), jnp.float32,
                                      -bound, bound)
    return params


def pack_params(params):
    """One-time packing of the 10 parameter tensors into 2 kernel inputs."""
    H, F = HIDDEN, INPUT_SIZE
    wih0_pad = jnp.zeros((F_PAD, H), jnp.float32).at[:F, :].set(params["wih0"])
    w_slab = jnp.concatenate(
        [wih0_pad, params["whh0"],
         params["wih1"], params["whh1"],
         params["wih2"], params["whh2"]], axis=0)          # (F_PAD + 5H, H)
    p_slab = jnp.zeros((8, H), jnp.float32)
    p_slab = p_slab.at[0:1, :].set(params["b0"])
    p_slab = p_slab.at[1:2, :].set(params["b1"])
    p_slab = p_slab.at[2:3, :].set(params["b2"])
    p_slab = p_slab.at[3:4, :].set(params["wo"])
    p_slab = p_slab.at[4, 0].set(params["bo"][0, 0])
    return {"w_slab": w_slab, "p_slab": p_slab}


def rnn_reference(x, params):
    """Pure-JAX reference of the same forward pass (for correctness check)."""
    B, T, F = x.shape
    H = HIDDEN
    h = [jnp.zeros((B, H), jnp.float32) for _ in range(NUM_LAYERS)]
    layer_w = [
        (params["wih0"], params["whh0"], params["b0"]),
        (params["wih1"], params["whh1"], params["b1"]),
        (params["wih2"], params["whh2"], params["b2"]),
    ]
    for t in range(T):
        inp = x[:, t, :]
        for l in range(NUM_LAYERS):
            wih, whh, b = layer_w[l]
            h[l] = jnp.tanh(inp @ wih + h[l] @ whh + b)
            inp = h[l]
    return h[-1] @ params["wo"].T + params["bo"]


if __name__ == "__main__":
    B, T, F = 8, 8, INPUT_SIZE
    key = jax.random.PRNGKey(0)
    kx, kp = jax.random.split(key)
    x = jax.random.normal(kx, (B, T, F), jnp.float32)
    params = init_params(kp)
    packed = pack_params(params)

    out = rnn_forward(x, packed["w_slab"], packed["p_slab"])
    out = jax.block_until_ready(out)

    ref = rnn_reference(x, params)
    assert out.shape == (B, 1), out.shape
    assert jnp.allclose(out, ref, atol=1e-4, rtol=1e-4), (
        "mismatch vs reference", out, ref)

    print("KERNEL_OK")
</pallas_src>

<mosaic_0001>
module attributes {stable_mosaic.version = 11 : i64} {
  func.func @_rnn_kernel(%arg0: memref<64x8xf32, #tpu.memory_space<vmem>>, %arg1: memref<328x64xf32, #tpu.memory_space<vmem>>, %arg2: memref<8x64xf32, #tpu.memory_space<vmem>>, %arg3: memref<8x1xf32, #tpu.memory_space<vmem>>) attributes {dimension_semantics = [], scalar_prefetch = 0 : i64, scratch_operands = 0 : i64, tpu.core_type = #tpu.core_type<tc>} {
    %c1 = arith.constant 1 : index
    %c0 = arith.constant 0 : index
    %0 = vector.load %arg2[%c1, %c0] : memref<8x64xf32, #tpu.memory_space<vmem>>, vector<1x64xf32>
    %1 = vector.shape_cast %0 : vector<1x64xf32> to vector<1x64xf32>
    %2 = vector.broadcast %1 : vector<1x64xf32> to vector<8x64xf32>
    %c2 = arith.constant 2 : index
    %c0_0 = arith.constant 0 : index
    %3 = vector.load %arg2[%c2, %c0_0] : memref<8x64xf32, #tpu.memory_space<vmem>>, vector<1x64xf32>
    %4 = vector.shape_cast %3 : vector<1x64xf32> to vector<1x64xf32>
    %5 = vector.broadcast %4 : vector<1x64xf32> to vector<8x64xf32>
    %c0_1 = arith.constant 0 : index
    %c0_2 = arith.constant 0 : index
    %6 = vector.load %arg0[%c0_1, %c0_2] : memref<64x8xf32, #tpu.memory_space<vmem>>, vector<64x8xf32>
    %c0_3 = arith.constant 0 : index
    %c0_4 = arith.constant 0 : index
    %7 = vector.load %arg1[%c0_3, %c0_4] : memref<328x64xf32, #tpu.memory_space<vmem>>, vector<8x64xf32>
    %cst = arith.constant dense<0.000000e+00> : vector<64x64xf32>
    %8 = tpu.matmul %6, %7, %cst {dimension_numbers = #tpu.dot_dimension_numbers<[1], [0], [0], [1], [0, 0, 1, 1], [], []>} : vector<64x8xf32>, vector<8x64xf32>, vector<64x64xf32> -> vector<64x64xf32>
    %c0_5 = arith.constant 0 : index
    %c0_6 = arith.constant 0 : index
    %9 = vector.load %arg2[%c0_5, %c0_6] : memref<8x64xf32, #tpu.memory_space<vmem>>, vector<1x64xf32>
    %10 = vector.broadcast %9 : vector<1x64xf32> to vector<64x64xf32>
    %11 = arith.addf %8, %10 : vector<64x64xf32>
    %cst_7 = arith.constant 0.000000e+00 : f32
    %12 = vector.broadcast %cst_7 : f32 to vector<8x64xf32>
    %cst_8 = arith.constant 0.000000e+00 : f32
    %13 = vector.broadcast %cst_8 : f32 to vector<8x64xf32>
    %cst_9 = arith.constant 0.000000e+00 : f32
    %14 = vector.broadcast %cst_9 : f32 to vector<8x64xf32>
    %15 = vector.extract_strided_slice %11 {offsets = [0, 0], sizes = [8, 64], strides = [1, 1]} : vector<64x64xf32> to vector<8x64xf32>
    %c8 = arith.constant 8 : index
    %c0_10 = arith.constant 0 : index
    %16 = vector.load %arg1[%c8, %c0_10] : memref<328x64xf32, #tpu.memory_space<vmem>>, vector<64x64xf32>
    %cst_11 = arith.constant dense<0.000000e+00> : vector<8x64xf32>
    %17 = tpu.matmul %12, %16, %cst_11 {dimension_numbers = #tpu.dot_dimension_numbers<[1], [0], [0], [1], [0, 0, 1, 1], [], []>} : vector<8x64xf32>, vector<64x64xf32>, vector<8x64xf32> -> vector<8x64xf32>
    %18 = arith.addf %15, %17 : vector<8x64xf32>
    %19 = math.tanh %18 : vector<8x64xf32>
    %c72 = arith.constant 72 : index
    %c0_12 = arith.constant 0 : index
    %20 = vector.load %arg1[%c72, %c0_12] : memref<328x64xf32, #tpu.memory_space<vmem>>, vector<64x64xf32>
    %cst_13 = arith.constant dense<0.000000e+00> : vector<8x64xf32>
    %21 = tpu.matmul %19, %20, %cst_13 {dimension_numbers = #tpu.dot_dimension_numbers<[1], [0], [0], [1], [0, 0, 1, 1], [], []>} : vector<8x64xf32>, vector<64x64xf32>, vector<8x64xf32> -> vector<8x64xf32>
    %c136 = arith.constant 136 : index
    %c0_14 = arith.constant 0 : index
    %22 = vector.load %arg1[%c136, %c0_14] : memref<328x64xf32, #tpu.memory_space<vmem>>, vector<64x64xf32>
    %cst_15 = arith.constant dense<0.000000e+00> : vector<8x64xf32>
    %23 = tpu.matmul %13, %22, %cst_15 {dimension_numbers = #tpu.dot_dimension_numbers<[1], [0], [0], [1], [0, 0, 1, 1], [], []>} : vector<8x64xf32>, vector<64x64xf32>, vector<8x64xf32> -> vector<8x64xf32>
    %24 = arith.addf %21, %23 : vector<8x64xf32>
    %25 = arith.addf %24, %2 : vector<8x64xf32>
    %26 = math.tanh %25 : vector<8x64xf32>
    %c200 = arith.constant 200 : index
    %c0_16 = arith.constant 0 : index
    %27 = vector.load %arg1[%c200, %c0_16] : memref<328x64xf32, #tpu.memory_space<vmem>>, vector<64x64xf32>
    %cst_17 = arith.constant dense<0.000000e+00> : vector<8x64xf32>
    %28 = tpu.matmul %26, %27, %cst_17 {dimension_numbers = #tpu.dot_dimension_numbers<[1], [0], [0], [1], [0, 0, 1, 1], [], []>} : vector<8x64xf32>, vector<64x64xf32>, vector<8x64xf32> -> vector<8x64xf32>
    %c264 = arith.constant 264 : index
    %c0_18 = arith.constant 0 : index
    %29 = vector.load %arg1[%c264, %c0_18] : memref<328x64xf32, #tpu.memory_space<vmem>>, vector<64x64xf32>
    %cst_19 = arith.constant dense<0.000000e+00> : vector<8x64xf32>
    %30 = tpu.matmul %14, %29, %cst_19 {dimension_numbers = #tpu.dot_dimension_numbers<[1], [0], [0], [1], [0, 0, 1, 1], [], []>} : vector<8x64xf32>, vector<64x64xf32>, vector<8x64xf32> -> vector<8x64xf32>
    %31 = arith.addf %28, %30 : vector<8x64xf32>
    %32 = arith.addf %31, %5 : vector<8x64xf32>
    %33 = math.tanh %32 : vector<8x64xf32>
    %34 = vector.extract_strided_slice %11 {offsets = [8, 0], sizes = [8, 64], strides = [1, 1]} : vector<64x64xf32> to vector<8x64xf32>
    %c8_20 = arith.constant 8 : index
    %c0_21 = arith.constant 0 : index
    %35 = vector.load %arg1[%c8_20, %c0_21] : memref<328x64xf32, #tpu.memory_space<vmem>>, vector<64x64xf32>
    %cst_22 = arith.constant dense<0.000000e+00> : vector<8x64xf32>
    %36 = tpu.matmul %19, %35, %cst_22 {dimension_numbers = #tpu.dot_dimension_numbers<[1], [0], [0], [1], [0, 0, 1, 1], [], []>} : vector<8x64xf32>, vector<64x64xf32>, vector<8x64xf32> -> vector<8x64xf32>
    %37 = arith.addf %34, %36 : vector<8x64xf32>
    %38 = math.tanh %37 : vector<8x64xf32>
    %c72_23 = arith.constant 72 : index
    %c0_24 = arith.constant 0 : index
    %39 = vector.load %arg1[%c72_23, %c0_24] : memref<328x64xf32, #tpu.memory_space<vmem>>, vector<64x64xf32>
    %cst_25 = arith.constant dense<0.000000e+00> : vector<8x64xf32>
    %40 = tpu.matmul %38, %39, %cst_25 {dimension_numbers = #tpu.dot_dimension_numbers<[1], [0], [0], [1], [0, 0, 1, 1], [], []>} : vector<8x64xf32>, vector<64x64xf32>, vector<8x64xf32> -> vector<8x64xf32>
    %c136_26 = arith.constant 136 : index
    %c0_27 = arith.constant 0 : index
    %41 = vector.load %arg1[%c136_26, %c0_27] : memref<328x64xf32, #tpu.memory_space<vmem>>, vector<64x64xf32>
    %cst_28 = arith.constant dense<0.000000e+00> : vector<8x64xf32>
    %42 = tpu.matmul %26, %41, %cst_28 {dimension_numbers = #tpu.dot_dimension_numbers<[1], [0], [0], [1], [0, 0, 1, 1], [], []>} : vector<8x64xf32>, vector<64x64xf32>, vector<8x64xf32> -> vector<8x64xf32>
    %43 = arith.addf %40, %42 : vector<8x64xf32>
    %44 = arith.addf %43, %2 : vector<8x64xf32>
    %45 = math.tanh %44 : vector<8x64xf32>
    %c200_29 = arith.constant 200 : index
    %c0_30 = arith.constant 0 : index
    %46 = vector.load %arg1[%c200_29, %c0_30] : memref<328x64xf32, #tpu.memory_space<vmem>>, vector<64x64xf32>
    %cst_31 = arith.constant dense<0.000000e+00> : vector<8x64xf32>
    %47 = tpu.matmul %45, %46, %cst_31 {dimension_numbers = #tpu.dot_dimension_numbers<[1], [0], [0], [1], [0, 0, 1, 1], [], []>} : vector<8x64xf32>, vector<64x64xf32>, vector<8x64xf32> -> vector<8x64xf32>
    %c264_32 = arith.constant 264 : index
    %c0_33 = arith.constant 0 : index
    %48 = vector.load %arg1[%c264_32, %c0_33] : memref<328x64xf32, #tpu.memory_space<vmem>>, vector<64x64xf32>
    %cst_34 = arith.constant dense<0.000000e+00> : vector<8x64xf32>
    %49 = tpu.matmul %33, %48, %cst_34 {dimension_numbers = #tpu.dot_dimension_numbers<[1], [0], [0], [1], [0, 0, 1, 1], [], []>} : vector<8x64xf32>, vector<64x64xf32>, vector<8x64xf32> -> vector<8x64xf32>
    %50 = arith.addf %47, %49 : vector<8x64xf32>
    %51 = arith.addf %50, %5 : vector<8x64xf32>
    %52 = math.tanh %51 : vector<8x64xf32>
    %53 = vector.extract_strided_slice %11 {offsets = [16, 0], sizes = [8, 64], strides = [1, 1]} : vector<64x64xf32> to vector<8x64xf32>
    %c8_35 = arith.constant 8 : index
    %c0_36 = arith.constant 0 : index
    %54 = vector.load %arg1[%c8_35, %c0_36] : memref<328x64xf32, #tpu.memory_space<vmem>>, vector<64x64xf32>
    %cst_37 = arith.constant dense<0.000000e+00> : vector<8x64xf32>
    %55 = tpu.matmul %38, %54, %cst_37 {dimension_numbers = #tpu.dot_dimension_numbers<[1], [0], [0], [1], [0, 0, 1, 1], [], []>} : vector<8x64xf32>, vector<64x64xf32>, vector<8x64xf32> -> vector<8x64xf32>
    %56 = arith.addf %53, %55 : vector<8x64xf32>
    %57 = math.tanh %56 : vector<8x64xf32>
    %c72_38 = arith.constant 72 : index
    %c0_39 = arith.constant 0 : index
    %58 = vector.load %arg1[%c72_38, %c0_39] : memref<328x64xf32, #tpu.memory_space<vmem>>, vector<64x64xf32>
    %cst_40 = arith.constant dense<0.000000e+00> : vector<8x64xf32>
    %59 = tpu.matmul %57, %58, %cst_40 {dimension_numbers = #tpu.dot_dimension_numbers<[1], [0], [0], [1], [0, 0, 1, 1], [], []>} : vector<8x64xf32>, vector<64x64xf32>, vector<8x64xf32> -> vector<8x64xf32>
    %c136_41 = arith.constant 136 : index
    %c0_42 = arith.constant 0 : index
    %60 = vector.load %arg1[%c136_41, %c0_42] : memref<328x64xf32, #tpu.memory_space<vmem>>, vector<64x64xf32>
    %cst_43 = arith.constant dense<0.000000e+00> : vector<8x64xf32>
    %61 = tpu.matmul %45, %60, %cst_43 {dimension_numbers = #tpu.dot_dimension_numbers<[1], [0], [0], [1], [0, 0, 1, 1], [], []>} : vector<8x64xf32>, vector<64x64xf32>, vector<8x64xf32> -> vector<8x64xf32>
    %62 = arith.addf %59, %61 : vector<8x64xf32>
    %63 = arith.addf %62, %2 : vector<8x64xf32>
    %64 = math.tanh %63 : vector<8x64xf32>
    %c200_44 = arith.constant 200 : index
    %c0_45 = arith.constant 0 : index
    %65 = vector.load %arg1[%c200_44, %c0_45] : memref<328x64xf32, #tpu.memory_space<vmem>>, vector<64x64xf32>
    %cst_46 = arith.constant dense<0.000000e+00> : vector<8x64xf32>
    %66 = tpu.matmul %64, %65, %cst_46 {dimension_numbers = #tpu.dot_dimension_numbers<[1], [0], [0], [1], [0, 0, 1, 1], [], []>} : vector<8x64xf32>, vector<64x64xf32>, vector<8x64xf32> -> vector<8x64xf32>
    %c264_47 = arith.constant 264 : index
    %c0_48 = arith.constant 0 : index
    %67 = vector.load %arg1[%c264_47, %c0_48] : memref<328x64xf32, #tpu.memory_space<vmem>>, vector<64x64xf32>
    %cst_49 = arith.constant dense<0.000000e+00> : vector<8x64xf32>
    %68 = tpu.matmul %52, %67, %cst_49 {dimension_numbers = #tpu.dot_dimension_numbers<[1], [0], [0], [1], [0, 0, 1, 1], [], []>} : vector<8x64xf32>, vector<64x64xf32>, vector<8x64xf32> -> vector<8x64xf32>
    %69 = arith.addf %66, %68 : vector<8x64xf32>
    %70 = arith.addf %69, %5 : vector<8x64xf32>
    %71 = math.tanh %70 : vector<8x64xf32>
    %72 = vector.extract_strided_slice %11 {offsets = [24, 0], sizes = [8, 64], strides = [1, 1]} : vector<64x64xf32> to vector<8x64xf32>
    %c8_50 = arith.constant 8 : index
    %c0_51 = arith.constant 0 : index
    %73 = vector.load %arg1[%c8_50, %c0_51] : memref<328x64xf32, #tpu.memory_space<vmem>>, vector<64x64xf32>
    %cst_52 = arith.constant dense<0.000000e+00> : vector<8x64xf32>
    %74 = tpu.matmul %57, %73, %cst_52 {dimension_numbers = #tpu.dot_dimension_numbers<[1], [0], [0], [1], [0, 0, 1, 1], [], []>} : vector<8x64xf32>, vector<64x64xf32>, vector<8x64xf32> -> vector<8x64xf32>
    %75 = arith.addf %72, %74 : vector<8x64xf32>
    %76 = math.tanh %75 : vector<8x64xf32>
    %c72_53 = arith.constant 72 : index
    %c0_54 = arith.constant 0 : index
    %77 = vector.load %arg1[%c72_53, %c0_54] : memref<328x64xf32, #tpu.memory_space<vmem>>, vector<64x64xf32>
    %cst_55 = arith.constant dense<0.000000e+00> : vector<8x64xf32>
    %78 = tpu.matmul %76, %77, %cst_55 {dimension_numbers = #tpu.dot_dimension_numbers<[1], [0], [0], [1], [0, 0, 1, 1], [], []>} : vector<8x64xf32>, vector<64x64xf32>, vector<8x64xf32> -> vector<8x64xf32>
    %c136_56 = arith.constant 136 : index
    %c0_57 = arith.constant 0 : index
    %79 = vector.load %arg1[%c136_56, %c0_57] : memref<328x64xf32, #tpu.memory_space<vmem>>, vector<64x64xf32>
    %cst_58 = arith.constant dense<0.000000e+00> : vector<8x64xf32>
    %80 = tpu.matmul %64, %79, %cst_58 {dimension_numbers = #tpu.dot_dimension_numbers<[1], [0], [0], [1], [0, 0, 1, 1], [], []>} : vector<8x64xf32>, vector<64x64xf32>, vector<8x64xf32> -> vector<8x64xf32>
    %81 = arith.addf %78, %80 : vector<8x64xf32>
    %82 = arith.addf %81, %2 : vector<8x64xf32>
    %83 = math.tanh %82 : vector<8x64xf32>
    %c200_59 = arith.constant 200 : index
    %c0_60 = arith.constant 0 : index
    %84 = vector.load %arg1[%c200_59, %c0_60] : memref<328x64xf32, #tpu.memory_space<vmem>>, vector<64x64xf32>
    %cst_61 = arith.constant dense<0.000000e+00> : vector<8x64xf32>
    %85 = tpu.matmul %83, %84, %cst_61 {dimension_numbers = #tpu.dot_dimension_numbers<[1], [0], [0], [1], [0, 0, 1, 1], [], []>} : vector<8x64xf32>, vector<64x64xf32>, vector<8x64xf32> -> vector<8x64xf32>
    %c264_62 = arith.constant 264 : index
    %c0_63 = arith.constant 0 : index
    %86 = vector.load %arg1[%c264_62, %c0_63] : memref<328x64xf32, #tpu.memory_space<vmem>>, vector<64x64xf32>
    %cst_64 = arith.constant dense<0.000000e+00> : vector<8x64xf32>
    %87 = tpu.matmul %71, %86, %cst_64 {dimension_numbers = #tpu.dot_dimension_numbers<[1], [0], [0], [1], [0, 0, 1, 1], [], []>} : vector<8x64xf32>, vector<64x64xf32>, vector<8x64xf32> -> vector<8x64xf32>
    %88 = arith.addf %85, %87 : vector<8x64xf32>
    %89 = arith.addf %88, %5 : vector<8x64xf32>
    %90 = math.tanh %89 : vector<8x64xf32>
    %91 = vector.extract_strided_slice %11 {offsets = [32, 0], sizes = [8, 64], strides = [1, 1]} : vector<64x64xf32> to vector<8x64xf32>
    %c8_65 = arith.constant 8 : index
    %c0_66 = arith.constant 0 : index
    %92 = vector.load %arg1[%c8_65, %c0_66] : memref<328x64xf32, #tpu.memory_space<vmem>>, vector<64x64xf32>
    %cst_67 = arith.constant dense<0.000000e+00> : vector<8x64xf32>
    %93 = tpu.matmul %76, %92, %cst_67 {dimension_numbers = #tpu.dot_dimension_numbers<[1], [0], [0], [1], [0, 0, 1, 1], [], []>} : vector<8x64xf32>, vector<64x64xf32>, vector<8x64xf32> -> vector<8x64xf32>
    %94 = arith.addf %91, %93 : vector<8x64xf32>
    %95 = math.tanh %94 : vector<8x64xf32>
    %c72_68 = arith.constant 72 : index
    %c0_69 = arith.constant 0 : index
    %96 = vector.load %arg1[%c72_68, %c0_69] : memref<328x64xf32, #tpu.memory_space<vmem>>, vector<64x64xf32>
    %cst_70 = arith.constant dense<0.000000e+00> : vector<8x64xf32>
    %97 = tpu.matmul %95, %96, %cst_70 {dimension_numbers = #tpu.dot_dimension_numbers<[1], [0], [0], [1], [0, 0, 1, 1], [], []>} : vector<8x64xf32>, vector<64x64xf32>, vector<8x64xf32> -> vector<8x64xf32>
    %c136_71 = arith.constant 136 : index
    %c0_72 = arith.constant 0 : index
    %98 = vector.load %arg1[%c136_71, %c0_72] : memref<328x64xf32, #tpu.memory_space<vmem>>, vector<64x64xf32>
    %cst_73 = arith.constant dense<0.000000e+00> : vector<8x64xf32>
    %99 = tpu.matmul %83, %98, %cst_73 {dimension_numbers = #tpu.dot_dimension_numbers<[1], [0], [0], [1], [0, 0, 1, 1], [], []>} : vector<8x64xf32>, vector<64x64xf32>, vector<8x64xf32> -> vector<8x64xf32>
    %100 = arith.addf %97, %99 : vector<8x64xf32>
    %101 = arith.addf %100, %2 : vector<8x64xf32>
    %102 = math.tanh %101 : vector<8x64xf32>
    %c200_74 = arith.constant 200 : index
    %c0_75 = arith.constant 0 : index
    %103 = vector.load %arg1[%c200_74, %c0_75] : memref<328x64xf32, #tpu.memory_space<vmem>>, vector<64x64xf32>
    %cst_76 = arith.constant dense<0.000000e+00> : vector<8x64xf32>
    %104 = tpu.matmul %102, %103, %cst_76 {dimension_numbers = #tpu.dot_dimension_numbers<[1], [0], [0], [1], [0, 0, 1, 1], [], []>} : vector<8x64xf32>, vector<64x64xf32>, vector<8x64xf32> -> vector<8x64xf32>
    %c264_77 = arith.constant 264 : index
    %c0_78 = arith.constant 0 : index
    %105 = vector.load %arg1[%c264_77, %c0_78] : memref<328x64xf32, #tpu.memory_space<vmem>>, vector<64x64xf32>
    %cst_79 = arith.constant dense<0.000000e+00> : vector<8x64xf32>
    %106 = tpu.matmul %90, %105, %cst_79 {dimension_numbers = #tpu.dot_dimension_numbers<[1], [0], [0], [1], [0, 0, 1, 1], [], []>} : vector<8x64xf32>, vector<64x64xf32>, vector<8x64xf32> -> vector<8x64xf32>
    %107 = arith.addf %104, %106 : vector<8x64xf32>
    %108 = arith.addf %107, %5 : vector<8x64xf32>
    %109 = math.tanh %108 : vector<8x64xf32>
    %110 = vector.extract_strided_slice %11 {offsets = [40, 0], sizes = [8, 64], strides = [1, 1]} : vector<64x64xf32> to vector<8x64xf32>
    %c8_80 = arith.constant 8 : index
    %c0_81 = arith.constant 0 : index
    %111 = vector.load %arg1[%c8_80, %c0_81] : memref<328x64xf32, #tpu.memory_space<vmem>>, vector<64x64xf32>
    %cst_82 = arith.constant dense<0.000000e+00> : vector<8x64xf32>
    %112 = tpu.matmul %95, %111, %cst_82 {dimension_numbers = #tpu.dot_dimension_numbers<[1], [0], [0], [1], [0, 0, 1, 1], [], []>} : vector<8x64xf32>, vector<64x64xf32>, vector<8x64xf32> -> vector<8x64xf32>
    %113 = arith.addf %110, %112 : vector<8x64xf32>
    %114 = math.tanh %113 : vector<8x64xf32>
    %c72_83 = arith.constant 72 : index
    %c0_84 = arith.constant 0 : index
    %115 = vector.load %arg1[%c72_83, %c0_84] : memref<328x64xf32, #tpu.memory_space<vmem>>, vector<64x64xf32>
    %cst_85 = arith.constant dense<0.000000e+00> : vector<8x64xf32>
    %116 = tpu.matmul %114, %115, %cst_85 {dimension_numbers = #tpu.dot_dimension_numbers<[1], [0], [0], [1], [0, 0, 1, 1], [], []>} : vector<8x64xf32>, vector<64x64xf32>, vector<8x64xf32> -> vector<8x64xf32>
    %c136_86 = arith.constant 136 : index
    %c0_87 = arith.constant 0 : index
    %117 = vector.load %arg1[%c136_86, %c0_87] : memref<328x64xf32, #tpu.memory_space<vmem>>, vector<64x64xf32>
    %cst_88 = arith.constant dense<0.000000e+00> : vector<8x64xf32>
    %118 = tpu.matmul %102, %117, %cst_88 {dimension_numbers = #tpu.dot_dimension_numbers<[1], [0], [0], [1], [0, 0, 1, 1], [], []>} : vector<8x64xf32>, vector<64x64xf32>, vector<8x64xf32> -> vector<8x64xf32>
    %119 = arith.addf %116, %118 : vector<8x64xf32>
    %120 = arith.addf %119, %2 : vector<8x64xf32>
    %121 = math.tanh %120 : vector<8x64xf32>
    %c200_89 = arith.constant 200 : index
    %c0_90 = arith.constant 0 : index
    %122 = vector.load %arg1[%c200_89, %c0_90] : memref<328x64xf32, #tpu.memory_space<vmem>>, vector<64x64xf32>
    %cst_91 = arith.constant dense<0.000000e+00> : vector<8x64xf32>
    %123 = tpu.matmul %121, %122, %cst_91 {dimension_numbers = #tpu.dot_dimension_numbers<[1], [0], [0], [1], [0, 0, 1, 1], [], []>} : vector<8x64xf32>, vector<64x64xf32>, vector<8x64xf32> -> vector<8x64xf32>
    %c264_92 = arith.constant 264 : index
    %c0_93 = arith.constant 0 : index
    %124 = vector.load %arg1[%c264_92, %c0_93] : memref<328x64xf32, #tpu.memory_space<vmem>>, vector<64x64xf32>
    %cst_94 = arith.constant dense<0.000000e+00> : vector<8x64xf32>
    %125 = tpu.matmul %109, %124, %cst_94 {dimension_numbers = #tpu.dot_dimension_numbers<[1], [0], [0], [1], [0, 0, 1, 1], [], []>} : vector<8x64xf32>, vector<64x64xf32>, vector<8x64xf32> -> vector<8x64xf32>
    %126 = arith.addf %123, %125 : vector<8x64xf32>
    %127 = arith.addf %126, %5 : vector<8x64xf32>
    %128 = math.tanh %127 : vector<8x64xf32>
    %129 = vector.extract_strided_slice %11 {offsets = [48, 0], sizes = [8, 64], strides = [1, 1]} : vector<64x64xf32> to vector<8x64xf32>
    %c8_95 = arith.constant 8 : index
    %c0_96 = arith.constant 0 : index
    %130 = vector.load %arg1[%c8_95, %c0_96] : memref<328x64xf32, #tpu.memory_space<vmem>>, vector<64x64xf32>
    %cst_97 = arith.constant dense<0.000000e+00> : vector<8x64xf32>
    %131 = tpu.matmul %114, %130, %cst_97 {dimension_numbers = #tpu.dot_dimension_numbers<[1], [0], [0], [1], [0, 0, 1, 1], [], []>} : vector<8x64xf32>, vector<64x64xf32>, vector<8x64xf32> -> vector<8x64xf32>
    %132 = arith.addf %129, %131 : vector<8x64xf32>
    %133 = math.tanh %132 : vector<8x64xf32>
    %c72_98 = arith.constant 72 : index
    %c0_99 = arith.constant 0 : index
    %134 = vector.load %arg1[%c72_98, %c0_99] : memref<328x64xf32, #tpu.memory_space<vmem>>, vector<64x64xf32>
    %cst_100 = arith.constant dense<0.000000e+00> : vector<8x64xf32>
    %135 = tpu.matmul %133, %134, %cst_100 {dimension_numbers = #tpu.dot_dimension_numbers<[1], [0], [0], [1], [0, 0, 1, 1], [], []>} : vector<8x64xf32>, vector<64x64xf32>, vector<8x64xf32> -> vector<8x64xf32>
    %c136_101 = arith.constant 136 : index
    %c0_102 = arith.constant 0 : index
    %136 = vector.load %arg1[%c136_101, %c0_102] : memref<328x64xf32, #tpu.memory_space<vmem>>, vector<64x64xf32>
    %cst_103 = arith.constant dense<0.000000e+00> : vector<8x64xf32>
    %137 = tpu.matmul %121, %136, %cst_103 {dimension_numbers = #tpu.dot_dimension_numbers<[1], [0], [0], [1], [0, 0, 1, 1], [], []>} : vector<8x64xf32>, vector<64x64xf32>, vector<8x64xf32> -> vector<8x64xf32>
    %138 = arith.addf %135, %137 : vector<8x64xf32>
    %139 = arith.addf %138, %2 : vector<8x64xf32>
    %140 = math.tanh %139 : vector<8x64xf32>
    %c200_104 = arith.constant 200 : index
    %c0_105 = arith.constant 0 : index
    %141 = vector.load %arg1[%c200_104, %c0_105] : memref<328x64xf32, #tpu.memory_space<vmem>>, vector<64x64xf32>
    %cst_106 = arith.constant dense<0.000000e+00> : vector<8x64xf32>
    %142 = tpu.matmul %140, %141, %cst_106 {dimension_numbers = #tpu.dot_dimension_numbers<[1], [0], [0], [1], [0, 0, 1, 1], [], []>} : vector<8x64xf32>, vector<64x64xf32>, vector<8x64xf32> -> vector<8x64xf32>
    %c264_107 = arith.constant 264 : index
    %c0_108 = arith.constant 0 : index
    %143 = vector.load %arg1[%c264_107, %c0_108] : memref<328x64xf32, #tpu.memory_space<vmem>>, vector<64x64xf32>
    %cst_109 = arith.constant dense<0.000000e+00> : vector<8x64xf32>
    %144 = tpu.matmul %128, %143, %cst_109 {dimension_numbers = #tpu.dot_dimension_numbers<[1], [0], [0], [1], [0, 0, 1, 1], [], []>} : vector<8x64xf32>, vector<64x64xf32>, vector<8x64xf32> -> vector<8x64xf32>
    %145 = arith.addf %142, %144 : vector<8x64xf32>
    %146 = arith.addf %145, %5 : vector<8x64xf32>
    %147 = math.tanh %146 : vector<8x64xf32>
    %148 = vector.extract_strided_slice %11 {offsets = [56, 0], sizes = [8, 64], strides = [1, 1]} : vector<64x64xf32> to vector<8x64xf32>
    %c8_110 = arith.constant 8 : index
    %c0_111 = arith.constant 0 : index
    %149 = vector.load %arg1[%c8_110, %c0_111] : memref<328x64xf32, #tpu.memory_space<vmem>>, vector<64x64xf32>
    %cst_112 = arith.constant dense<0.000000e+00> : vector<8x64xf32>
    %150 = tpu.matmul %133, %149, %cst_112 {dimension_numbers = #tpu.dot_dimension_numbers<[1], [0], [0], [1], [0, 0, 1, 1], [], []>} : vector<8x64xf32>, vector<64x64xf32>, vector<8x64xf32> -> vector<8x64xf32>
    %151 = arith.addf %148, %150 : vector<8x64xf32>
    %152 = math.tanh %151 : vector<8x64xf32>
    %c72_113 = arith.constant 72 : index
    %c0_114 = arith.constant 0 : index
    %153 = vector.load %arg1[%c72_113, %c0_114] : memref<328x64xf32, #tpu.memory_space<vmem>>, vector<64x64xf32>
    %cst_115 = arith.constant dense<0.000000e+00> : vector<8x64xf32>
    %154 = tpu.matmul %152, %153, %cst_115 {dimension_numbers = #tpu.dot_dimension_numbers<[1], [0], [0], [1], [0, 0, 1, 1], [], []>} : vector<8x64xf32>, vector<64x64xf32>, vector<8x64xf32> -> vector<8x64xf32>
    %c136_116 = arith.constant 136 : index
    %c0_117 = arith.constant 0 : index
    %155 = vector.load %arg1[%c136_116, %c0_117] : memref<328x64xf32, #tpu.memory_space<vmem>>, vector<64x64xf32>
    %cst_118 = arith.constant dense<0.000000e+00> : vector<8x64xf32>
    %156 = tpu.matmul %140, %155, %cst_118 {dimension_numbers = #tpu.dot_dimension_numbers<[1], [0], [0], [1], [0, 0, 1, 1], [], []>} : vector<8x64xf32>, vector<64x64xf32>, vector<8x64xf32> -> vector<8x64xf32>
    %157 = arith.addf %154, %156 : vector<8x64xf32>
    %158 = arith.addf %157, %2 : vector<8x64xf32>
    %159 = math.tanh %158 : vector<8x64xf32>
    %c200_119 = arith.constant 200 : index
    %c0_120 = arith.constant 0 : index
    %160 = vector.load %arg1[%c200_119, %c0_120] : memref<328x64xf32, #tpu.memory_space<vmem>>, vector<64x64xf32>
    %cst_121 = arith.constant dense<0.000000e+00> : vector<8x64xf32>
    %161 = tpu.matmul %159, %160, %cst_121 {dimension_numbers = #tpu.dot_dimension_numbers<[1], [0], [0], [1], [0, 0, 1, 1], [], []>} : vector<8x64xf32>, vector<64x64xf32>, vector<8x64xf32> -> vector<8x64xf32>
    %c264_122 = arith.constant 264 : index
    %c0_123 = arith.constant 0 : index
    %162 = vector.load %arg1[%c264_122, %c0_123] : memref<328x64xf32, #tpu.memory_space<vmem>>, vector<64x64xf32>
    %cst_124 = arith.constant dense<0.000000e+00> : vector<8x64xf32>
    %163 = tpu.matmul %147, %162, %cst_124 {dimension_numbers = #tpu.dot_dimension_numbers<[1], [0], [0], [1], [0, 0, 1, 1], [], []>} : vector<8x64xf32>, vector<64x64xf32>, vector<8x64xf32> -> vector<8x64xf32>
    %164 = arith.addf %161, %163 : vector<8x64xf32>
    %165 = arith.addf %164, %5 : vector<8x64xf32>
    %166 = math.tanh %165 : vector<8x64xf32>
    %c3 = arith.constant 3 : index
    %c0_125 = arith.constant 0 : index
    %167 = vector.load %arg2[%c3, %c0_125] : memref<8x64xf32, #tpu.memory_space<vmem>>, vector<1x64xf32>
    %c4 = arith.constant 4 : index
    %c0_126 = arith.constant 0 : index
    %168 = vector.load %arg2[%c4, %c0_126] : memref<8x64xf32, #tpu.memory_space<vmem>>, vector<1x64xf32>
    %169 = vector.extract_strided_slice %168 {offsets = [0, 0], sizes = [1, 1], strides = [1, 1]} : vector<1x64xf32> to vector<1x1xf32>
    %170 = vector.broadcast %167 : vector<1x64xf32> to vector<8x64xf32>
    %171 = arith.mulf %166, %170 : vector<8x64xf32>
    %cst_127 = arith.constant dense<0.000000e+00> : vector<8xf32>
    %172 = vector.multi_reduction <add>, %171, %cst_127 [1] : vector<8x64xf32> to vector<8xf32>
    %173 = vector.shape_cast %172 : vector<8xf32> to vector<8x1xf32>
    %174 = vector.broadcast %169 : vector<1x1xf32> to vector<8x1xf32>
    %175 = arith.addf %173, %174 : vector<8x1xf32>
    %c0_128 = arith.constant 0 : index
    %c0_129 = arith.constant 0 : index
    %176 = vector.load %arg3[%c0_128, %c0_129] : memref<8x1xf32, #tpu.memory_space<vmem>>, vector<8x1xf32>
    tpu.vector_store %arg3[%c0_128, %c0_129], %175 {strides = array<i32>} : memref<8x1xf32, #tpu.memory_space<vmem>>, vector<8x1xf32>,
    return
  }
}

</mosaic_0001>

<bundles_post_ra>
// kernel: rnn_forward.1
= control target key start
LH: loop header
LB: loop body
LE: loop exit
PB: predicated region body
PF: predicated region fallthrough
CT: control target
= control target key end

     0   :  { %v4874_v0 = vmov 0.0|0.0   ;;  %vm4875_vm0 = vmmov 0   ;;  %v4876_v4 = vmov 0.0   ;;  %vm38_vm1 = vcmask 64512   ;;  %s5592_s1 = inlined_call_operand.vmem [shape: f32[328,64], index: 1, kind: input, shape index: {}]   ;;  %s5593_s0 = inlined_call_operand.vmem [shape: f32[64,8], index: 0, kind: input, shape index: {}]   ;;  %s5594_s2 = inlined_call_operand.vmem [shape: f32[8,64], index: 2, kind: input, shape index: {}]   ;;  %s5595_s3 = inlined_call_operand.vmem [shape: f32[8,1], index: 3, kind: output, shape index: {}]  }
   0x1   :  { %4343 = vmatprep.subr.bf16.mxu1 %v4874_v0  ;;  %v168_v1 = vld [vmem:[%s5592_s1 + $0x8] sm:$0xff]  ;;  %v169_v2 = vld [vmem:[%s5592_s1 + $0x10] sm:$0xff]  ;;  %v170_v3 = vld [vmem:[%s5592_s1 + $0x18] sm:$0xff]  ;;  %3599 = vmatprep.mubr.msk.f32.mxu1 %vm4875_vm0, %v4876_v4  ;;  %vm176_vm2 = vcmask 523264   ;;  %vm3144_vm3 = vcmask 7168  }
   0x2   :  { %v4909_v5 = vpack.c.bf16 %v169_v2, %v168_v1  ;;  %v171_v6 = vld [vmem:[%s5592_s1 + $0x20] sm:$0xff]  ;;  %v25_v10 = vld [vmem:[%s5593_s0 + $0x8] sm:$0xff]  ;;  %v173_v13 = vld [vmem:[%s5592_s1 + $0x30] sm:$0xff] }
   0x3   :  { %v32_v7 = vld [vmem:[%s5592_s1] sm:$0xff]  ;;  %v4921_v9 = vpack.c.bf16 %v171_v6, %v170_v3  ;;  %v260_v11 = vld [vmem:[%s5592_s1 + $0x88] sm:$0xff]  ;;  %v261_v14 = vld [vmem:[%s5592_s1 + $0x90] sm:$0xff] }
   0x4   :  { %v24_v8 = vld [vmem:[%s5593_s0] sm:$0xff]  ;;  %4345 = vmatpush3.bf16.msra.mxu1 %v4909_v5  ;;  %3569 = vmatprep.subr.mxu0 %v32_v7  ;;  %v172_v12 = vld [vmem:[%s5592_s1 + $0x28] sm:$0xff]  ;;  %v4941_v15 = vpack.c.bf16 %v261_v14, %v260_v11  ;;  %v26_v16 = vld [vmem:[%s5593_s0 + $0x10] sm:$0xff] }
   0x5   :  { %4346 = vmatprep.subr.bf16.mxu1 %v4874_v0  ;;  %3570 = vmatpush3.msra.mxu0 %v32_v7  ;;  %v262_v17 = vld [vmem:[%s5592_s1 + $0x98] sm:$0xff]  ;;  %v263_v18 = vld [vmem:[%s5592_s1 + $0xa0] sm:$0xff]  ;;  %v4954_v19 = vpack.c.bf16 %v173_v13, %v172_v12  ;;  %v264_v24 = vld [vmem:[%s5592_s1 + $0xa8] sm:$0xff] }
   0x6   :  { %3571 = vmatprep.mubr.msk.f32.mxu0 %vm38_vm1, %v24_v8  ;;  %4355 = vmatprep.subr.bf16.mxu0 %v4874_v0  ;;  %v174_v20 = vld [vmem:[%s5592_s1 + $0x38] sm:$0xff]  ;;  %v4963_v22 = vpack.c.bf16 %v263_v18, %v262_v17  ;;  %v175_v23 = vld [vmem:[%s5592_s1 + $0x40] sm:$0xff]  ;;  %v265_v25 = vld [vmem:[%s5592_s1 + $0xb0] sm:$0xff] }
   0x7   :  { %3572 = vmatmul.mubr.msk.f32.vlgmr.msra.gmra.mrb[0].mxu0 %vm38_vm1, %v25_v10  ;;  %v27_v21 = vld [vmem:[%s5593_s0 + $0x18] sm:$0xff]  ;;  %v28_v26 = vld [vmem:[%s5593_s0 + $0x20] sm:$0xff]  ;;  %v4982_v27 = vpack.c.bf16 %v175_v23, %v174_v20  ;;  %v29_v28 = vld [vmem:[%s5593_s0 + $0x28] sm:$0xff]  ;;  %v4988_v29 = vpack.c.bf16 %v265_v25, %v264_v24 }
   0x8   :  { %4348 = vmatpush3.bf16.msra.mxu1 %v4921_v9  ;;  %4357 = vmatpush3.bf16.msra.mxu0 %v4941_v15  ;;  %v266_v30 = vld [vmem:[%s5592_s1 + $0xb8] sm:$0xff]  ;;  %v267_v31 = vld [vmem:[%s5592_s1 + $0xc0] sm:$0xff]  ;;  %v30_v32 = vld [vmem:[%s5593_s0 + $0x30] sm:$0xff] }
   0x9   :  { %4349 = vmatprep.subr.bf16.mxu1 %v4874_v0  ;;  %3574 = vmatprep.mubr.msk.f32.mxu0 %vm38_vm1, %v26_v16  ;;  %v31_v33 = vld [vmem:[%s5593_s0 + $0x38] sm:$0xff]  ;;  %v5008_v34 = vpack.c.bf16 %v267_v31, %v266_v30  ;;  %v421_v35 = vld [vmem:[%s5592_s1 + $0x108] sm:$0xff]  ;;  %v422_v36 = vld [vmem:[%s5592_s1 + $0x110] sm:$0xff] }
   0xa   :  { %4358 = vmatprep.subr.bf16.mxu0 %v4874_v0  ;;  %v5024_v37 = vpack.c.bf16 %v422_v36, %v421_v35  ;;  %v423_v38 = vld [vmem:[%s5592_s1 + $0x118] sm:$0xff]  ;;  %v424_v39 = vld [vmem:[%s5592_s1 + $0x120] sm:$0xff]  ;;  %v425_v41 = vld [vmem:[%s5592_s1 + $0x128] sm:$0xff] }
   0xb   :  { %3575 = vmatmul.mubr.msk.f32.gmra.mrb[2].mxu0 %vm38_vm1, %v27_v21  ;;  %v5037_v40 = vpack.c.bf16 %v424_v39, %v423_v38  ;;  %v426_v42 = vld [vmem:[%s5592_s1 + $0x130] sm:$0xff]  ;;  %v427_v44 = vld [vmem:[%s5592_s1 + $0x138] sm:$0xff]  ;;  %v428_v45 = vld [vmem:[%s5592_s1 + $0x140] sm:$0xff] }
   0xc   :  { %4351 = vmatpush3.bf16.msra.mxu1 %v4954_v19  ;;  %4360 = vmatpush3.bf16.msra.mxu0 %v4963_v22  ;;  %v5049_v43 = vpack.c.bf16 %v426_v42, %v425_v41  ;;  %v5059_v46 = vpack.c.bf16 %v428_v45, %v427_v44  ;;  %v252_v47 = vld [vmem:[%s5592_s1 + $0x48] sm:$0xff]  ;;  %v253_v48 = vld [vmem:[%s5592_s1 + $0x50] sm:$0xff]  ;;  %v254_v50 = vld [vmem:[%s5592_s1 + $0x58] sm:$0xff] }
   0xd   :  { %4352 = vmatprep.subr.bf16.mxu1 %v4874_v0  ;;  %3577 = vmatprep.mubr.msk.f32.mxu0 %vm38_vm1, %v28_v26  ;;  %v5081_v49 = vpack.c.bf16 %v253_v48, %v252_v47  ;;  %v255_v51 = vld [vmem:[%s5592_s1 + $0x60] sm:$0xff]  ;;  %v256_v53 = vld [vmem:[%s5592_s1 + $0x68] sm:$0xff]  ;;  %v257_v54 = vld [vmem:[%s5592_s1 + $0x70] sm:$0xff] }
   0xe   :  { %4361 = vmatprep.subr.bf16.mxu0 %v4874_v0  ;;  %v5091_v52 = vpack.c.bf16 %v255_v51, %v254_v50  ;;  %v5101_v55 = vpack.c.bf16 %v257_v54, %v256_v53  ;;  %v258_v56 = vld [vmem:[%s5592_s1 + $0x78] sm:$0xff]  ;;  %v259_v57 = vld [vmem:[%s5592_s1 + $0x80] sm:$0xff]  ;;  %v414_v30 = vld [vmem:[%s5592_s1 + $0xd0] sm:$0xff] }
   0xf   :  { %3578 = vmatmul.mubr.msk.f32.gmra.mrb[4].mxu0 %vm38_vm1, %v29_v28  ;;  %v5110_v58 = vpack.c.bf16 %v259_v57, %v258_v56  ;;  %v3152_v59 = vld [vmem:[%s5594_s2] ss:$0 sm:$0xff]  ;;  %v413_v28 = vld [vmem:[%s5592_s1 + $0xc8] sm:$0xff]  ;;  %v418_v38 = vld [vmem:[%s5592_s1 + $0xf0] sm:$0xff] }
  0x10   :  { %4354 = vmatpush3.bf16.msra.mxu1 %v4982_v27  ;;  %4363 = vmatpush3.bf16.msra.mxu0 %v4988_v29  ;;  %v5152_v31 = vpack.c.bf16 %v414_v30, %v413_v28  ;;  %v417_v36 = vld [vmem:[%s5592_s1 + $0xe8] sm:$0xff]  ;;  %v419_v39 = vld [vmem:[%s5592_s1 + $0xf8] sm:$0xff]  ;;  %v420_v42 = vld [vmem:[%s5592_s1 + $0x100] sm:$0xff] }
  0x11   :  { %3580 = vmatprep.mubr.msk.f32.mxu0 %vm38_vm1, %v30_v32  ;;  %4364 = vmatprep.subr.bf16.mxu0 %v4874_v0  ;;  %v415_v32 = vld [vmem:[%s5592_s1 + $0xd8] sm:$0xff]  ;;  %v5175_v41 = vpack.c.bf16 %v418_v38, %v417_v36  ;;  %v5181_v44 = vpack.c.bf16 %v420_v42, %v419_v39  ;;  %v5189_v45 = vld [vmem:[%s5594_s2 + $0x1] ss:$0 sm:$0xff] }
  0x12   :  { %4367 = vmatprep.subr.bf16.mxu1 %v4874_v0 }
  0x13   :  { %3600 = vmatmul.mubr.f32.vlgmr.msra.gmra.mrb[0].mxu1 %v4876_v4  ;;  %3581 = vmatmul.mubr.msk.f32.gmra.mrb[6].mxu0 %vm38_vm1, %v31_v33  ;;  %v416_v33 = vld [vmem:[%s5592_s1 + $0xe0] sm:$0xff] }
  0x14   :  { %4366 = vmatpush3.bf16.msra.mxu0 %v5008_v34  ;;  %3618 = vmatprep.mubr.msk.f32.mxu0 %vm4875_vm0, %v4876_v4  ;;  %v5162_v35 = vpack.c.bf16 %v416_v33, %v415_v32 }
  0x15   :  { %4379 = vmatprep.subr.bf16.mxu0 %v4874_v0  ;;  %3637 = vmatprep.mubr.msk.f32.mxu1 %vm4875_vm0, %v4876_v4 }
  0x16   :  { %4369 = vmatpush3.bf16.msra.mxu1 %v5081_v49 }
  0x17   :  { %3619 = vmatmul.mubr.f32.vlgmr.msra.gmra.mrb[8].mxu0 %v4876_v4  ;;  %4370 = vmatprep.subr.bf16.mxu1 %v4874_v0 }
  0x18   :  { %4381 = vmatpush3.bf16.msra.mxu0 %v5024_v37  ;;  %3656 = vmatprep.mubr.msk.f32.mxu0 %vm4875_vm0, %v4876_v4 }
  0x19   :  { %4382 = vmatprep.subr.bf16.mxu0 %v4874_v0 }
  0x1a   :  { %4372 = vmatpush3.bf16.msra.mxu1 %v5091_v52 }
  0x1b   :  { %4373 = vmatprep.subr.bf16.mxu1 %v4874_v0 }
  0x1c   :  { %4384 = vmatpush3.bf16.msra.mxu0 %v5037_v40 }
  0x1d   :  { %4385 = vmatprep.subr.bf16.mxu0 %v4874_v0 }
  0x1e   :  { %4375 = vmatpush3.bf16.msra.mxu1 %v5101_v55 }
  0x1f   :  { %4376 = vmatprep.subr.bf16.mxu1 %v4874_v0 }
  0x20   :  { %4387 = vmatpush3.bf16.msra.mxu0 %v5049_v43 }
  0x21   :  { %4388 = vmatprep.subr.bf16.mxu0 %v4874_v0 }
  0x22   :  { %4378 = vmatpush3.bf16.msra.mxu1 %v5110_v58 }
  0x23   :  { %4391 = vmatprep.subr.bf16.mxu1 %v4874_v0 }
  0x24   :  { %4390 = vmatpush3.bf16.msra.mxu0 %v5059_v46 }
  0x25   :  { %4403 = vmatprep.subr.bf16.mxu0 %v4874_v0 }
  0x27   :  { %3657 = vmatmul.mubr.f32.vlgmr.msra.gmra.mrb[10].mxu0 %v4876_v4 }
  0x28   :  { %4405 = vmatpush3.bf16.msra.mxu0 %v4909_v5  ;;  %3694 = vmatprep.mubr.msk.f32.mxu0 %vm4875_vm0, %v4876_v4 }
  0x29   :  { %4406 = vmatprep.subr.bf16.mxu0 %v4874_v0 }
  0x2c   :  { %4408 = vmatpush3.bf16.msra.mxu0 %v4921_v9 }
  0x2d   :  { %4409 = vmatprep.subr.bf16.mxu0 %v4874_v0 }
  0x30   :  { %4411 = vmatpush3.bf16.msra.mxu0 %v4954_v19 }
  0x31   :  { %4412 = vmatprep.subr.bf16.mxu0 %v4874_v0 }
  0x34   :  { %4414 = vmatpush3.bf16.msra.mxu0 %v4982_v27 }
  0x35   :  { %4427 = vmatprep.subr.bf16.mxu0 %v4874_v0 }
  0xda   :  { %v3573_v60 = vpop.f32.mrb[0].mxu0 }
  0xdb   :  { %v135_v61 = vadd.f32 %v3573_v60, %v3152_v59  ;;  %v129_v62 = vpop.f32.mrb[1].mxu0 }
  0xdc   :  { %v130_v7 = vadd.f32 %v3152_v59, %v129_v62  ;;  %v5228_v62 = vld [vmem:[%s5594_s2 + $0x2] ss:$0 sm:$0xff] }
  0xde   :  { %v3576_v63 = vpop.f32.mrb[2].mxu0 }
  0xdf   :  { %v5118_v1 = vadd.f32 %v3576_v63, %v3152_v59  ;;  %v139_v2 = vpop.f32.mrb[3].mxu0 }
  0xe0   :  { %v5120_v3 = vadd.f32 %v3152_v59, %v139_v2 }
  0xe2   :  { %v3579_v6 = vpop.f32.mrb[4].mxu0 }
  0xe3   :  { %v5122_v8 = vadd.f32 %v3579_v6, %v3152_v59  ;;  %v149_v10 = vpop.f32.mrb[5].mxu0 }
  0xe4   :  { %v5124_v11 = vadd.f32 %v3152_v59, %v149_v10 }
  0xe6   :  { %v246_v12 = vpop.f32.mrb[0].mxu1  ;;  %v3582_v13 = vpop.f32.mrb[6].mxu0 }
  0xe7   :  { %v250_v14 = vadd.f32 %v246_v12, %v130_v7  ;;  %v3601_v16 = vpop.f32.mrb[1].mxu1  ;;  %v5126_v17 = vadd.f32 %v3582_v13, %v3152_v59  ;;  %v159_v18 = vpop.f32.mrb[7].mxu0 }
  0xe8   :  { %v5128_v20 = vadd.f32 %v3152_v59, %v159_v18 }
  0xe9   :  { %4826 = vtanh.f32 %v250_v14 }
  0xea   :  { %v334_v21 = vpop.f32.mrb[8].mxu0 }
  0xeb   :  { %v3620_v23 = vpop.f32.mrb[9].mxu0 }
  0xf3   :  { %v4827_v24 = vpop.eup %4826 }
  0xf4   :  { %3638 = vmatmul.mubr.msk.f32.vlgmr.msra.gmra.mrb[2].mxu1 %vm176_vm2, %v4827_v24  ;;  %3695 = vmatmul.mubr.msk.f32.vlgmr.msra.gmra.mrb[12].mxu0 %vm176_vm2, %v4827_v24 }
  0xf5   :  { %4429 = vmatpush3.bf16.msra.mxu0 %v5081_v49  ;;  %3732 = vmatprep.mubr.msk.f32.mxu0 %vm4875_vm0, %v4876_v4 }
  0xf6   :  { %4430 = vmatprep.subr.bf16.mxu0 %v4874_v0  ;;  %3675 = vmatprep.mubr.msk.f32.mxu1 %vm4875_vm0, %v4876_v4 }
  0xf7   :  { %4393 = vmatpush3.bf16.msra.mxu1 %v5152_v31 }
  0xf8   :  { %4394 = vmatprep.subr.bf16.mxu1 %v4874_v0 }
  0xf9   :  { %4432 = vmatpush3.bf16.msra.mxu0 %v5091_v52 }
  0xfa   :  { %v5139_v25 = vpop.f32.mrb[10].mxu0  ;;  %4433 = vmatprep.subr.bf16.mxu0 %v4874_v0 }
  0xfb   :  { %v3658_v26 = vpop.f32.mrb[11].mxu0  ;;  %4396 = vmatpush3.bf16.msra.mxu1 %v5162_v35 }
  0xfc   :  { %4397 = vmatprep.subr.bf16.mxu1 %v4874_v0 }
  0xfd   :  { %4435 = vmatpush3.bf16.msra.mxu0 %v5101_v55 }
  0xfe   :  { %4436 = vmatprep.subr.bf16.mxu0 %v4874_v0 }
  0xff   :  { %4399 = vmatpush3.bf16.msra.mxu1 %v5175_v41 }
 0x100   :  { %4400 = vmatprep.subr.bf16.mxu1 %v4874_v0 }
 0x101   :  { %4438 = vmatpush3.bf16.msra.mxu0 %v5110_v58 }
 0x102   :  { %4451 = vmatprep.subr.bf16.mxu0 %v4874_v0 }
 0x103   :  { %4402 = vmatpush3.bf16.msra.mxu1 %v5181_v44 }
 0x104   :  { %4415 = vmatprep.subr.bf16.mxu1 %v4874_v0 }
 0x1c7   :  { %v407_v47 = vpop.f32.mrb[2].mxu1  ;;  %v640_v48 = vpop.f32.mrb[12].mxu0 }
 0x1c8   :  { %v408_v50 = vadd.f32 %v407_v47, %v334_v21  ;;  %v644_v51 = vadd.f32 %v640_v48, %v135_v61  ;;  %v3639_v53 = vpop.f32.mrb[3].mxu1  ;;  %v3696_v54 = vpop.f32.mrb[13].mxu0 }
 0x1ca   :  { %v411_v56 = vadd.f32 %v5189_v45, %v408_v50  ;;  %4828 = vtanh.f32 %v644_v51 }
 0x1cc   :  { %4830 = vtanh.f32 %v411_v56 }
 0x1d4   :  { %v4829_v57 = vpop.eup %4828 }
 0x1d5   :  { %3733 = vmatmul.mubr.msk.f32.vlgmr.msra.gmra.mrb[14].mxu0 %vm176_vm2, %v4829_v57 }
 0x1d6   :  { %v4831_v59 = vpop.eup %4830  ;;  %4453 = vmatpush3.bf16.msra.mxu0 %v5152_v31  ;;  %3770 = vmatprep.mubr.msk.f32.mxu0 %vm4875_vm0, %v4876_v4 }
 0x1d7   :  { %3676 = vmatmul.mubr.msk.f32.vlgmr.msra.gmra.mrb[4].mxu1 %vm176_vm2, %v4831_v59  ;;  %4454 = vmatprep.subr.bf16.mxu0 %v4874_v0 }
 0x1d8   :  { %4417 = vmatpush3.bf16.msra.mxu1 %v4941_v15  ;;  %3713 = vmatprep.mubr.msk.f32.mxu1 %vm4875_vm0, %v4876_v4 }
 0x1d9   :  { %4418 = vmatprep.subr.bf16.mxu1 %v4874_v0 }
 0x1da   :  { %4456 = vmatpush3.bf16.msra.mxu0 %v5162_v35 }
 0x1db   :  { %4457 = vmatprep.subr.bf16.mxu0 %v4874_v0 }
 0x1dc   :  { %4420 = vmatpush3.bf16.msra.mxu1 %v4963_v22 }
 0x1dd   :  { %4421 = vmatprep.subr.bf16.mxu1 %v4874_v0 }
 0x1de   :  { %4459 = vmatpush3.bf16.msra.mxu0 %v5175_v41 }
 0x1df   :  { %4460 = vmatprep.subr.bf16.mxu0 %v4874_v0 }
 0x1e0   :  { %4423 = vmatpush3.bf16.msra.mxu1 %v4988_v29 }
 0x1e1   :  { %4424 = vmatprep.subr.bf16.mxu1 %v4874_v0 }
 0x1e2   :  { %4462 = vmatpush3.bf16.msra.mxu0 %v5181_v44 }
 0x1e3   :  { %4475 = vmatprep.subr.bf16.mxu0 %v4874_v0 }
 0x1e4   :  { %4426 = vmatpush3.bf16.msra.mxu1 %v5008_v34 }
 0x1e5   :  { %4439 = vmatprep.subr.bf16.mxu1 %v4874_v0 }
 0x1e7   :  { %3714 = vmatmul.mubr.msk.f32.vlgmr.msra.gmra.mrb[6].mxu1 %vm176_vm2, %v4831_v59 }
 0x1e8   :  { %4441 = vmatpush3.bf16.msra.mxu1 %v5024_v37  ;;  %3751 = vmatprep.mubr.msk.f32.mxu1 %vm4875_vm0, %v4876_v4 }
 0x1e9   :  { %4442 = vmatprep.subr.bf16.mxu1 %v4874_v0 }
 0x1ec   :  { %4444 = vmatpush3.bf16.msra.mxu1 %v5037_v40 }
 0x1ed   :  { %4445 = vmatprep.subr.bf16.mxu1 %v4874_v0 }
 0x1f0   :  { %4447 = vmatpush3.bf16.msra.mxu1 %v5049_v43 }
 0x1f1   :  { %4448 = vmatprep.subr.bf16.mxu1 %v4874_v0 }
 0x1f4   :  { %4450 = vmatpush3.bf16.msra.mxu1 %v5059_v46 }
 0x1f5   :  { %4463 = vmatprep.subr.bf16.mxu1 %v4874_v0 }
 0x2a8   :  { %v785_v60 = vpop.f32.mrb[14].mxu0 }
 0x2a9   :  { %v3734_v61 = vpop.f32.mrb[15].mxu0 }
 0x2aa   :  { %v568_v63 = vpop.f32.mrb[4].mxu1 }
 0x2ab   :  { %v569_v2 = vadd.f32 %v568_v63, %v5139_v25  ;;  %v3677_v6 = vpop.f32.mrb[5].mxu1 }
 0x2ad   :  { %v572_v7 = vadd.f32 %v5228_v62, %v569_v2 }
 0x2af   :  { %4832 = vtanh.f32 %v572_v7 }
 0x2b9   :  { %v4833_v10 = vpop.eup %4832 }
 0x2ba   :  { %v712_v12 = vpop.f32.mrb[6].mxu1  ;;  %3752 = vmatmul.mubr.msk.f32.vlgmr.msra.gmra.mrb[8].mxu1 %vm176_vm2, %v4833_v10 }
 0x2bb   :  { %v786_v13 = vadd.f32 %v785_v60, %v712_v12  ;;  %v3715_v14 = vpop.f32.mrb[7].mxu1  ;;  %4465 = vmatpush3.bf16.msra.mxu1 %v4909_v5  ;;  %3789 = vmatprep.mubr.msk.f32.mxu1 %vm4875_vm0, %v4876_v4 }
 0x2bc   :  { %4466 = vmatprep.subr.bf16.mxu1 %v4874_v0 }
 0x2bd   :  { %v789_v16 = vadd.f32 %v5189_v45, %v786_v13 }
 0x2bf   :  { %4834 = vtanh.f32 %v789_v16  ;;  %4468 = vmatpush3.bf16.msra.mxu1 %v4921_v9 }
 0x2c0   :  { %4469 = vmatprep.subr.bf16.mxu1 %v4874_v0 }
 0x2c3   :  { %4471 = vmatpush3.bf16.msra.mxu1 %v4954_v19 }
 0x2c4   :  { %4472 = vmatprep.subr.bf16.mxu1 %v4874_v0 }
 0x2c7   :  { %4474 = vmatpush3.bf16.msra.mxu1 %v4982_v27 }
 0x2c8   :  { %4487 = vmatprep.subr.bf16.mxu1 %v4874_v0 }
 0x2c9   :  { %v4835_v18 = vpop.eup %4834 }
 0x2ca   :  { %3771 = vmatmul.mubr.msk.f32.vlgmr.msra.gmra.mrb[16].mxu0 %vm176_vm2, %v4835_v18  ;;  %3790 = vmatmul.mubr.msk.f32.vlgmr.msra.gmra.mrb[10].mxu1 %vm176_vm2, %v4829_v57 }
 0x2cb   :  { %4477 = vmatpush3.bf16.msra.mxu0 %v4941_v15  ;;  %3808 = vmatprep.mubr.msk.f32.mxu0 %vm4875_vm0, %v4876_v4 }
 0x2cc   :  { %4478 = vmatprep.subr.bf16.mxu0 %v4874_v0  ;;  %4489 = vmatpush3.bf16.msra.mxu1 %v5081_v49 }
 0x2cd   :  { %4490 = vmatprep.subr.bf16.mxu1 %v4874_v0  ;;  %3827 = vmatprep.mubr.msk.f32.mxu1 %vm4875_vm0, %v4876_v4 }
 0x2cf   :  { %4480 = vmatpush3.bf16.msra.mxu0 %v4963_v22 }
 0x2d0   :  { %4481 = vmatprep.subr.bf16.mxu0 %v4874_v0  ;;  %4492 = vmatpush3.bf16.msra.mxu1 %v5091_v52 }
 0x2d1   :  { %4493 = vmatprep.subr.bf16.mxu1 %v4874_v0 }
 0x2d3   :  { %4483 = vmatpush3.bf16.msra.mxu0 %v4988_v29 }
 0x2d4   :  { %4484 = vmatprep.subr.bf16.mxu0 %v4874_v0  ;;  %4495 = vmatpush3.bf16.msra.mxu1 %v5101_v55 }
 0x2d5   :  { %4496 = vmatprep.subr.bf16.mxu1 %v4874_v0 }
 0x2d7   :  { %4486 = vmatpush3.bf16.msra.mxu0 %v5008_v34 }
 0x2d8   :  { %4499 = vmatprep.subr.bf16.mxu0 %v4874_v0  ;;  %4498 = vmatpush3.bf16.msra.mxu1 %v5110_v58 }
 0x2d9   :  { %4511 = vmatprep.subr.bf16.mxu1 %v4874_v0 }
 0x2da   :  { %3809 = vmatmul.mubr.msk.f32.vlgmr.msra.gmra.mrb[18].mxu0 %vm176_vm2, %v4835_v18 }
 0x2db   :  { %4501 = vmatpush3.bf16.msra.mxu0 %v5024_v37  ;;  %3846 = vmatprep.mubr.msk.f32.mxu0 %vm4875_vm0, %v4876_v4 }
 0x2dc   :  { %4502 = vmatprep.subr.bf16.mxu0 %v4874_v0 }
 0x2df   :  { %4504 = vmatpush3.bf16.msra.mxu0 %v5037_v40 }
 0x2e0   :  { %4505 = vmatprep.subr.bf16.mxu0 %v4874_v0 }
 0x2e3   :  { %4507 = vmatpush3.bf16.msra.mxu0 %v5049_v43 }
 0x2e4   :  { %4508 = vmatprep.subr.bf16.mxu0 %v4874_v0 }
 0x2e7   :  { %4510 = vmatpush3.bf16.msra.mxu0 %v5059_v46 }
 0x2e8   :  { %4523 = vmatprep.subr.bf16.mxu0 %v4874_v0 }
 0x38d   :  { %v860_v21 = vpop.f32.mrb[8].mxu1 }
 0x38e   :  { %v3753_v23 = vpop.f32.mrb[9].mxu1 }
 0x39d   :  { %v933_v24 = vpop.f32.mrb[16].mxu0  ;;  %v1005_v25 = vpop.f32.mrb[10].mxu1 }
 0x39e   :  { %v934_v26 = vadd.f32 %v933_v24, %v860_v21  ;;  %v1009_v28 = vadd.f32 %v1005_v25, %v5120_v3  ;;  %v3772_v30 = vpop.f32.mrb[17].mxu0  ;;  %v3791_v32 = vpop.f32.mrb[11].mxu1 }
 0x3a0   :  { %v937_v33 = vadd.f32 %v5228_v62, %v934_v26  ;;  %4836 = vtanh.f32 %v1009_v28 }
 0x3a2   :  { %4838 = vtanh.f32 %v937_v33 }
 0x3aa   :  { %v4837_v36 = vpop.eup %4836 }
 0x3ab   :  { %3828 = vmatmul.mubr.msk.f32.vlgmr.msra.gmra.mrb[12].mxu1 %vm176_vm2, %v4837_v36 }
 0x3ac   :  { %v4839_v38 = vpop.eup %4838  ;;  %4513 = vmatpush3.bf16.msra.mxu1 %v5152_v31  ;;  %3865 = vmatprep.mubr.msk.f32.mxu1 %vm4875_vm0, %v4876_v4 }
 0x3ad   :  { %v1077_v39 = vpop.f32.mrb[18].mxu0  ;;  %3847 = vmatmul.mubr.msk.f32.vlgmr.msra.gmra.mrb[20].mxu0 %vm176_vm2, %v4839_v38  ;;  %4514 = vmatprep.subr.bf16.mxu1 %v4874_v0 }
 0x3ae   :  { %v3810_v3 = vpop.f32.mrb[19].mxu0  ;;  %4525 = vmatpush3.bf16.msra.mxu0 %v4909_v5  ;;  %3884 = vmatprep.mubr.msk.f32.mxu0 %vm4875_vm0, %v4876_v4 }
 0x3af   :  { %4526 = vmatprep.subr.bf16.mxu0 %v4874_v0 }
 0x3b0   :  { %4516 = vmatpush3.bf16.msra.mxu1 %v5162_v35 }
 0x3b1   :  { %4517 = vmatprep.subr.bf16.mxu1 %v4874_v0 }
 0x3b2   :  { %4528 = vmatpush3.bf16.msra.mxu0 %v4921_v9 }
 0x3b3   :  { %4529 = vmatprep.subr.bf16.mxu0 %v4874_v0 }
 0x3b4   :  { %4519 = vmatpush3.bf16.msra.mxu1 %v5175_v41 }
 0x3b5   :  { %4520 = vmatprep.subr.bf16.mxu1 %v4874_v0 }
 0x3b6   :  { %4531 = vmatpush3.bf16.msra.mxu0 %v4954_v19 }
 0x3b7   :  { %4532 = vmatprep.subr.bf16.mxu0 %v4874_v0 }
 0x3b8   :  { %4522 = vmatpush3.bf16.msra.mxu1 %v5181_v44 }
 0x3b9   :  { %4535 = vmatprep.subr.bf16.mxu1 %v4874_v0 }
 0x3ba   :  { %4534 = vmatpush3.bf16.msra.mxu0 %v4982_v27 }
 0x3bb   :  { %4547 = vmatprep.subr.bf16.mxu0 %v4874_v0 }
 0x3bd   :  { %3885 = vmatmul.mubr.msk.f32.vlgmr.msra.gmra.mrb[22].mxu0 %vm176_vm2, %v4837_v36 }
 0x3be   :  { %4549 = vmatpush3.bf16.msra.mxu0 %v5081_v49  ;;  %3922 = vmatprep.mubr.msk.f32.mxu0 %vm4875_vm0, %v4876_v4 }
 0x3bf   :  { %4550 = vmatprep.subr.bf16.mxu0 %v4874_v0 }
 0x3c2   :  { %4552 = vmatpush3.bf16.msra.mxu0 %v5091_v52 }
 0x3c3   :  { %4553 = vmatprep.subr.bf16.mxu0 %v4874_v0 }
 0x3c6   :  { %4555 = vmatpush3.bf16.msra.mxu0 %v5101_v55 }
 0x3c7   :  { %4556 = vmatprep.subr.bf16.mxu0 %v4874_v0 }
 0x3ca   :  { %4558 = vmatpush3.bf16.msra.mxu0 %v5110_v58 }
 0x3cb   :  { %4571 = vmatprep.subr.bf16.mxu0 %v4874_v0 }
 0x47e   :  { %v1150_v42 = vpop.f32.mrb[12].mxu1 }
 0x47f   :  { %v1151_v47 = vadd.f32 %v1150_v42, %v1077_v39  ;;  %v3829_v48 = vpop.f32.mrb[13].mxu1 }
 0x480   :  { %v1225_v50 = vpop.f32.mrb[20].mxu0 }
 0x481   :  { %v1154_v51 = vadd.f32 %v5189_v45, %v1151_v47  ;;  %v3848_v53 = vpop.f32.mrb[21].mxu0 }
 0x483   :  { %4840 = vtanh.f32 %v1154_v51 }
 0x48d   :  { %v4841_v54 = vpop.eup %4840 }
 0x48e   :  { %3866 = vmatmul.mubr.msk.f32.vlgmr.msra.gmra.mrb[14].mxu1 %vm176_vm2, %v4841_v54 }
 0x48f   :  { %4537 = vmatpush3.bf16.msra.mxu1 %v4941_v15  ;;  %3903 = vmatprep.mubr.msk.f32.mxu1 %vm4875_vm0, %v4876_v4 }
 0x490   :  { %v1370_v56 = vpop.f32.mrb[22].mxu0  ;;  %4538 = vmatprep.subr.bf16.mxu1 %v4874_v0 }
 0x491   :  { %v1374_v57 = vadd.f32 %v1370_v56, %v5118_v1  ;;  %v3886_v59 = vpop.f32.mrb[23].mxu0 }
 0x493   :  { %4842 = vtanh.f32 %v1374_v57  ;;  %4540 = vmatpush3.bf16.msra.mxu1 %v4963_v22 }
 0x494   :  { %4541 = vmatprep.subr.bf16.mxu1 %v4874_v0 }
 0x497   :  { %4543 = vmatpush3.bf16.msra.mxu1 %v4988_v29 }
 0x498   :  { %4544 = vmatprep.subr.bf16.mxu1 %v4874_v0 }
 0x49b   :  { %4546 = vmatpush3.bf16.msra.mxu1 %v5008_v34 }
 0x49c   :  { %4559 = vmatprep.subr.bf16.mxu1 %v4874_v0 }
 0x49d   :  { %v4843_v60 = vpop.eup %4842 }
 0x49e   :  { %3904 = vmatmul.mubr.msk.f32.vlgmr.msra.gmra.mrb[16].mxu1 %vm176_vm2, %v4841_v54  ;;  %3923 = vmatmul.mubr.msk.f32.vlgmr.msra.gmra.mrb[24].mxu0 %vm176_vm2, %v4843_v60 }
 0x49f   :  { %4561 = vmatpush3.bf16.msra.mxu1 %v5024_v37  ;;  %3941 = vmatprep.mubr.msk.f32.mxu1 %vm4875_vm0, %v4876_v4 }
 0x4a0   :  { %4562 = vmatprep.subr.bf16.mxu1 %v4874_v0  ;;  %4573 = vmatpush3.bf16.msra.mxu0 %v5152_v31 }
 0x4a1   :  { %4574 = vmatprep.subr.bf16.mxu0 %v4874_v0  ;;  %3960 = vmatprep.mubr.msk.f32.mxu0 %vm4875_vm0, %v4876_v4 }
 0x4a3   :  { %4564 = vmatpush3.bf16.msra.mxu1 %v5037_v40 }
 0x4a4   :  { %4565 = vmatprep.subr.bf16.mxu1 %v4874_v0  ;;  %4576 = vmatpush3.bf16.msra.mxu0 %v5162_v35 }
 0x4a5   :  { %4577 = vmatprep.subr.bf16.mxu0 %v4874_v0 }
 0x4a7   :  { %4567 = vmatpush3.bf16.msra.mxu1 %v5049_v43 }
 0x4a8   :  { %4568 = vmatprep.subr.bf16.mxu1 %v4874_v0  ;;  %4579 = vmatpush3.bf16.msra.mxu0 %v5175_v41 }
 0x4a9   :  { %4580 = vmatprep.subr.bf16.mxu0 %v4874_v0 }
 0x4ab   :  { %4570 = vmatpush3.bf16.msra.mxu1 %v5059_v46 }
 0x4ac   :  { %4583 = vmatprep.subr.bf16.mxu1 %v4874_v0  ;;  %4582 = vmatpush3.bf16.msra.mxu0 %v5181_v44 }
 0x4ad   :  { %4595 = vmatprep.subr.bf16.mxu0 %v4874_v0 }
 0x561   :  { %v1298_v1 = vpop.f32.mrb[14].mxu1 }
 0x562   :  { %v1299_v61 = vadd.f32 %v1298_v1, %v1225_v50  ;;  %v3867_v63 = vpop.f32.mrb[15].mxu1 }
 0x564   :  { %v1302_v2 = vadd.f32 %v5228_v62, %v1299_v61 }
 0x566   :  { %4844 = vtanh.f32 %v1302_v2 }
 0x570   :  { %v4845_v6 = vpop.eup %4844 }
 0x571   :  { %v1442_v7 = vpop.f32.mrb[16].mxu1  ;;  %v1515_v10 = vpop.f32.mrb[24].mxu0  ;;  %3942 = vmatmul.mubr.msk.f32.vlgmr.msra.gmra.mrb[18].mxu1 %vm176_vm2, %v4845_v6 }
 0x572   :  { %v1516_v12 = vadd.f32 %v1515_v10, %v1442_v7  ;;  %v3905_v13 = vpop.f32.mrb[17].mxu1  ;;  %v3924_v14 = vpop.f32.mrb[25].mxu0  ;;  %4585 = vmatpush3.bf16.msra.mxu1 %v4909_v5  ;;  %3979 = vmatprep.mubr.msk.f32.mxu1 %vm4875_vm0, %v4876_v4 }
 0x573   :  { %4586 = vmatprep.subr.bf16.mxu1 %v4874_v0 }
 0x574   :  { %v1519_v16 = vadd.f32 %v5189_v45, %v1516_v12 }
 0x576   :  { %4846 = vtanh.f32 %v1519_v16  ;;  %4588 = vmatpush3.bf16.msra.mxu1 %v4921_v9 }
 0x577   :  { %4589 = vmatprep.subr.bf16.mxu1 %v4874_v0 }
 0x57a   :  { %4591 = vmatpush3.bf16.msra.mxu1 %v4954_v19 }
 0x57b   :  { %4592 = vmatprep.subr.bf16.mxu1 %v4874_v0 }
 0x57e   :  { %4594 = vmatpush3.bf16.msra.mxu1 %v4982_v27 }
 0x57f   :  { %4607 = vmatprep.subr.bf16.mxu1 %v4874_v0 }
 0x580   :  { %v4847_v18 = vpop.eup %4846 }
 0x581   :  { %3961 = vmatmul.mubr.msk.f32.vlgmr.msra.gmra.mrb[26].mxu0 %vm176_vm2, %v4847_v18  ;;  %3980 = vmatmul.mubr.msk.f32.vlgmr.msra.gmra.mrb[20].mxu1 %vm176_vm2, %v4843_v60 }
 0x582   :  { %4597 = vmatpush3.bf16.msra.mxu0 %v4941_v15  ;;  %3998 = vmatprep.mubr.msk.f32.mxu0 %vm4875_vm0, %v4876_v4 }
 0x583   :  { %4598 = vmatprep.subr.bf16.mxu0 %v4874_v0  ;;  %4609 = vmatpush3.bf16.msra.mxu1 %v5081_v49 }
 0x584   :  { %4610 = vmatprep.subr.bf16.mxu1 %v4874_v0  ;;  %4017 = vmatprep.mubr.msk.f32.mxu1 %vm4875_vm0, %v4876_v4 }
 0x586   :  { %4600 = vmatpush3.bf16.msra.mxu0 %v4963_v22 }
 0x587   :  { %4601 = vmatprep.subr.bf16.mxu0 %v4874_v0  ;;  %4612 = vmatpush3.bf16.msra.mxu1 %v5091_v52 }
 0x588   :  { %4613 = vmatprep.subr.bf16.mxu1 %v4874_v0 }
 0x58a   :  { %4603 = vmatpush3.bf16.msra.mxu0 %v4988_v29 }
 0x58b   :  { %4604 = vmatprep.subr.bf16.mxu0 %v4874_v0  ;;  %4615 = vmatpush3.bf16.msra.mxu1 %v5101_v55 }
 0x58c   :  { %4616 = vmatprep.subr.bf16.mxu1 %v4874_v0 }
 0x58e   :  { %4606 = vmatpush3.bf16.msra.mxu0 %v5008_v34 }
 0x58f   :  { %4619 = vmatprep.subr.bf16.mxu0 %v4874_v0  ;;  %4618 = vmatpush3.bf16.msra.mxu1 %v5110_v58 }
 0x590   :  { %4631 = vmatprep.subr.bf16.mxu1 %v4874_v0 }
 0x591   :  { %3999 = vmatmul.mubr.msk.f32.vlgmr.msra.gmra.mrb[28].mxu0 %vm176_vm2, %v4847_v18 }
 0x592   :  { %4621 = vmatpush3.bf16.msra.mxu0 %v5024_v37  ;;  %4036 = vmatprep.mubr.msk.f32.mxu0 %vm4875_vm0, %v4876_v4 }
 0x593   :  { %4622 = vmatprep.subr.bf16.mxu0 %v4874_v0 }
 0x596   :  { %4624 = vmatpush3.bf16.msra.mxu0 %v5037_v40 }
 0x597   :  { %4625 = vmatprep.subr.bf16.mxu0 %v4874_v0 }
 0x59a   :  { %4627 = vmatpush3.bf16.msra.mxu0 %v5049_v43 }
 0x59b   :  { %4628 = vmatprep.subr.bf16.mxu0 %v4874_v0 }
 0x59e   :  { %4630 = vmatpush3.bf16.msra.mxu0 %v5059_v46 }
 0x59f   :  { %4643 = vmatprep.subr.bf16.mxu0 %v4874_v0 }
 0x644   :  { %v1590_v21 = vpop.f32.mrb[18].mxu1 }
 0x645   :  { %v3943_v23 = vpop.f32.mrb[19].mxu1 }
 0x654   :  { %v1663_v24 = vpop.f32.mrb[26].mxu0  ;;  %v1735_v25 = vpop.f32.mrb[20].mxu1 }
 0x655   :  { %v1664_v26 = vadd.f32 %v1663_v24, %v1590_v21  ;;  %v1739_v28 = vadd.f32 %v1735_v25, %v5124_v11  ;;  %v3962_v30 = vpop.f32.mrb[27].mxu0  ;;  %v3981_v32 = vpop.f32.mrb[21].mxu1 }
 0x657   :  { %v1667_v33 = vadd.f32 %v5228_v62, %v1664_v26  ;;  %4848 = vtanh.f32 %v1739_v28 }
 0x659   :  { %4850 = vtanh.f32 %v1667_v33 }
 0x661   :  { %v4849_v36 = vpop.eup %4848 }
 0x662   :  { %4018 = vmatmul.mubr.msk.f32.vlgmr.msra.gmra.mrb[22].mxu1 %vm176_vm2, %v4849_v36 }
 0x663   :  { %v4851_v38 = vpop.eup %4850  ;;  %4633 = vmatpush3.bf16.msra.mxu1 %v5152_v31  ;;  %4055 = vmatprep.mubr.msk.f32.mxu1 %vm4875_vm0, %v4876_v4 }
 0x664   :  { %v1807_v39 = vpop.f32.mrb[28].mxu0  ;;  %4037 = vmatmul.mubr.msk.f32.vlgmr.msra.gmra.mrb[30].mxu0 %vm176_vm2, %v4851_v38  ;;  %4634 = vmatprep.subr.bf16.mxu1 %v4874_v0 }
 0x665   :  { %v4000_v11 = vpop.f32.mrb[29].mxu0  ;;  %4645 = vmatpush3.bf16.msra.mxu0 %v4909_v5  ;;  %4074 = vmatprep.mubr.msk.f32.mxu0 %vm4875_vm0, %v4876_v4 }
 0x666   :  { %4646 = vmatprep.subr.bf16.mxu0 %v4874_v0 }
 0x667   :  { %4636 = vmatpush3.bf16.msra.mxu1 %v5162_v35 }
 0x668   :  { %4637 = vmatprep.subr.bf16.mxu1 %v4874_v0 }
 0x669   :  { %4648 = vmatpush3.bf16.msra.mxu0 %v4921_v9 }
 0x66a   :  { %4649 = vmatprep.subr.bf16.mxu0 %v4874_v0 }
 0x66b   :  { %4639 = vmatpush3.bf16.msra.mxu1 %v5175_v41 }
 0x66c   :  { %4640 = vmatprep.subr.bf16.mxu1 %v4874_v0 }
 0x66d   :  { %4651 = vmatpush3.bf16.msra.mxu0 %v4954_v19 }
 0x66e   :  { %4652 = vmatprep.subr.bf16.mxu0 %v4874_v0 }
 0x66f   :  { %4642 = vmatpush3.bf16.msra.mxu1 %v5181_v44 }
 0x670   :  { %4655 = vmatprep.subr.bf16.mxu1 %v4874_v0 }
 0x671   :  { %4654 = vmatpush3.bf16.msra.mxu0 %v4982_v27 }
 0x672   :  { %4667 = vmatprep.subr.bf16.mxu0 %v4874_v0 }
 0x674   :  { %4075 = vmatmul.mubr.msk.f32.vlgmr.msra.gmra.mrb[32].mxu0 %vm176_vm2, %v4849_v36 }
 0x675   :  { %4669 = vmatpush3.bf16.msra.mxu0 %v5081_v49  ;;  %4112 = vmatprep.mubr.msk.f32.mxu0 %vm4875_vm0, %v4876_v4 }
 0x676   :  { %4670 = vmatprep.subr.bf16.mxu0 %v4874_v0 }
 0x679   :  { %4672 = vmatpush3.bf16.msra.mxu0 %v5091_v52 }
 0x67a   :  { %4673 = vmatprep.subr.bf16.mxu0 %v4874_v0 }
 0x67d   :  { %4675 = vmatpush3.bf16.msra.mxu0 %v5101_v55 }
 0x67e   :  { %4676 = vmatprep.subr.bf16.mxu0 %v4874_v0 }
 0x681   :  { %4678 = vmatpush3.bf16.msra.mxu0 %v5110_v58 }
 0x682   :  { %4691 = vmatprep.subr.bf16.mxu0 %v4874_v0 }
 0x735   :  { %v1880_v3 = vpop.f32.mrb[22].mxu1 }
 0x736   :  { %v1881_v42 = vadd.f32 %v1880_v3, %v1807_v39  ;;  %v4019_v47 = vpop.f32.mrb[23].mxu1 }
 0x737   :  { %v1955_v48 = vpop.f32.mrb[30].mxu0 }
 0x738   :  { %v1884_v50 = vadd.f32 %v5189_v45, %v1881_v42  ;;  %v4038_v51 = vpop.f32.mrb[31].mxu0 }
 0x73a   :  { %4852 = vtanh.f32 %v1884_v50 }
 0x744   :  { %v4853_v53 = vpop.eup %4852 }
 0x745   :  { %4056 = vmatmul.mubr.msk.f32.vlgmr.msra.gmra.mrb[24].mxu1 %vm176_vm2, %v4853_v53 }
 0x746   :  { %4657 = vmatpush3.bf16.msra.mxu1 %v4941_v15  ;;  %4093 = vmatprep.mubr.msk.f32.mxu1 %vm4875_vm0, %v4876_v4 }
 0x747   :  { %v2100_v54 = vpop.f32.mrb[32].mxu0  ;;  %4658 = vmatprep.subr.bf16.mxu1 %v4874_v0 }
 0x748   :  { %v2104_v56 = vadd.f32 %v2100_v54, %v5122_v8  ;;  %v4076_v57 = vpop.f32.mrb[33].mxu0 }
 0x74a   :  { %4854 = vtanh.f32 %v2104_v56  ;;  %4660 = vmatpush3.bf16.msra.mxu1 %v4963_v22 }
 0x74b   :  { %4661 = vmatprep.subr.bf16.mxu1 %v4874_v0 }
 0x74e   :  { %4663 = vmatpush3.bf16.msra.mxu1 %v4988_v29 }
 0x74f   :  { %4664 = vmatprep.subr.bf16.mxu1 %v4874_v0 }
 0x752   :  { %4666 = vmatpush3.bf16.msra.mxu1 %v5008_v34 }
 0x753   :  { %4679 = vmatprep.subr.bf16.mxu1 %v4874_v0 }
 0x754   :  { %v4855_v59 = vpop.eup %4854 }
 0x755   :  { %4094 = vmatmul.mubr.msk.f32.vlgmr.msra.gmra.mrb[26].mxu1 %vm176_vm2, %v4853_v53  ;;  %4113 = vmatmul.mubr.msk.f32.vlgmr.msra.gmra.mrb[34].mxu0 %vm176_vm2, %v4855_v59  ;;  %v3199_v53 = vld [vmem:[%s5594_s2 + $0x4] ss:$0 sm:$0xff] }
 0x756   :  { %4681 = vmatpush3.bf16.msra.mxu1 %v5024_v37  ;;  %4131 = vmatprep.mubr.msk.f32.mxu1 %vm4875_vm0, %v4876_v4 }
 0x757   :  { %4682 = vmatprep.subr.bf16.mxu1 %v4874_v0  ;;  %4693 = vmatpush3.bf16.msra.mxu0 %v5152_v31 }
 0x758   :  { %4694 = vmatprep.subr.bf16.mxu0 %v4874_v0  ;;  %4150 = vmatprep.mubr.msk.f32.mxu0 %vm4875_vm0, %v4876_v4 }
 0x75a   :  { %4684 = vmatpush3.bf16.msra.mxu1 %v5037_v40 }
 0x75b   :  { %4685 = vmatprep.subr.bf16.mxu1 %v4874_v0  ;;  %4696 = vmatpush3.bf16.msra.mxu0 %v5162_v35 }
 0x75c   :  { %4697 = vmatprep.subr.bf16.mxu0 %v4874_v0 }
 0x75e   :  { %4687 = vmatpush3.bf16.msra.mxu1 %v5049_v43 }
 0x75f   :  { %4688 = vmatprep.subr.bf16.mxu1 %v4874_v0  ;;  %4699 = vmatpush3.bf16.msra.mxu0 %v5175_v41 }
 0x760   :  { %4700 = vmatprep.subr.bf16.mxu0 %v4874_v0 }
 0x762   :  { %4690 = vmatpush3.bf16.msra.mxu1 %v5059_v46 }
 0x763   :  { %4703 = vmatprep.subr.bf16.mxu1 %v4874_v0  ;;  %4702 = vmatpush3.bf16.msra.mxu0 %v5181_v44 }
 0x764   :  { %4715 = vmatprep.subr.bf16.mxu0 %v4874_v0 }
 0x818   :  { %v2028_v8 = vpop.f32.mrb[24].mxu1 }
 0x819   :  { %v2029_v60 = vadd.f32 %v2028_v8, %v1955_v48  ;;  %v4057_v1 = vpop.f32.mrb[25].mxu1  ;;  %v3198_v48 = vld [vmem:[%s5594_s2 + $0x3] ss:$0 sm:$0xff] }
 0x81b   :  { %v2032_v61 = vadd.f32 %v5228_v62, %v2029_v60 }
 0x81d   :  { %4856 = vtanh.f32 %v2032_v61 }
 0x827   :  { %v4857_v63 = vpop.eup %4856 }
 0x828   :  { %v2172_v2 = vpop.f32.mrb[26].mxu1  ;;  %v2245_v6 = vpop.f32.mrb[34].mxu0  ;;  %4132 = vmatmul.mubr.msk.f32.vlgmr.msra.gmra.mrb[28].mxu1 %vm176_vm2, %v4857_v63 }
 0x829   :  { %v2246_v7 = vadd.f32 %v2245_v6, %v2172_v2  ;;  %v4095_v10 = vpop.f32.mrb[27].mxu1  ;;  %v4114_v12 = vpop.f32.mrb[35].mxu0  ;;  %4705 = vmatpush3.bf16.msra.mxu1 %v4909_v5  ;;  %4169 = vmatprep.mubr.msk.f32.mxu1 %vm4875_vm0, %v4876_v4 }
 0x82a   :  { %4706 = vmatprep.subr.bf16.mxu1 %v4874_v0 }
 0x82b   :  { %v2249_v13 = vadd.f32 %v5189_v45, %v2246_v7 }
 0x82d   :  { %4858 = vtanh.f32 %v2249_v13  ;;  %4708 = vmatpush3.bf16.msra.mxu1 %v4921_v9 }
 0x82e   :  { %4709 = vmatprep.subr.bf16.mxu1 %v4874_v0 }
 0x831   :  { %4711 = vmatpush3.bf16.msra.mxu1 %v4954_v19 }
 0x832   :  { %4712 = vmatprep.subr.bf16.mxu1 %v4874_v0 }
 0x835   :  { %4714 = vmatpush3.bf16.msra.mxu1 %v4982_v27 }
 0x836   :  { %4727 = vmatprep.subr.bf16.mxu1 %v4874_v0 }
 0x837   :  { %v4859_v14 = vpop.eup %4858 }
 0x838   :  { %4151 = vmatmul.mubr.msk.f32.vlgmr.msra.gmra.mrb[36].mxu0 %vm176_vm2, %v4859_v14  ;;  %4170 = vmatmul.mubr.msk.f32.vlgmr.msra.gmra.mrb[30].mxu1 %vm176_vm2, %v4855_v59 }
 0x839   :  { %4717 = vmatpush3.bf16.msra.mxu0 %v4941_v15  ;;  %4188 = vmatprep.mubr.msk.f32.mxu0 %vm4875_vm0, %v4876_v4 }
 0x83a   :  { %4718 = vmatprep.subr.bf16.mxu0 %v4874_v0  ;;  %4729 = vmatpush3.bf16.msra.mxu1 %v5081_v49 }
 0x83b   :  { %4730 = vmatprep.subr.bf16.mxu1 %v4874_v0  ;;  %4207 = vmatprep.mubr.msk.f32.mxu1 %vm4875_vm0, %v4876_v4 }
 0x83d   :  { %4720 = vmatpush3.bf16.msra.mxu0 %v4963_v22 }
 0x83e   :  { %4721 = vmatprep.subr.bf16.mxu0 %v4874_v0  ;;  %4732 = vmatpush3.bf16.msra.mxu1 %v5091_v52 }
 0x83f   :  { %4733 = vmatprep.subr.bf16.mxu1 %v4874_v0 }
 0x841   :  { %4723 = vmatpush3.bf16.msra.mxu0 %v4988_v29 }
 0x842   :  { %4724 = vmatprep.subr.bf16.mxu0 %v4874_v0  ;;  %4735 = vmatpush3.bf16.msra.mxu1 %v5101_v55 }
 0x843   :  { %4736 = vmatprep.subr.bf16.mxu1 %v4874_v0 }
 0x845   :  { %4726 = vmatpush3.bf16.msra.mxu0 %v5008_v34 }
 0x846   :  { %4739 = vmatprep.subr.bf16.mxu0 %v4874_v0  ;;  %4738 = vmatpush3.bf16.msra.mxu1 %v5110_v58 }
 0x847   :  { %4751 = vmatprep.subr.bf16.mxu1 %v4874_v0 }
 0x848   :  { %4189 = vmatmul.mubr.msk.f32.vlgmr.msra.gmra.mrb[38].mxu0 %vm176_vm2, %v4859_v14 }
 0x849   :  { %4741 = vmatpush3.bf16.msra.mxu0 %v5024_v37  ;;  %4226 = vmatprep.mubr.msk.f32.mxu0 %vm4875_vm0, %v4876_v4 }
 0x84a   :  { %4742 = vmatprep.subr.bf16.mxu0 %v4874_v0 }
 0x84d   :  { %4744 = vmatpush3.bf16.msra.mxu0 %v5037_v40 }
 0x84e   :  { %4745 = vmatprep.subr.bf16.mxu0 %v4874_v0 }
 0x851   :  { %4747 = vmatpush3.bf16.msra.mxu0 %v5049_v43 }
 0x852   :  { %4748 = vmatprep.subr.bf16.mxu0 %v4874_v0 }
 0x855   :  { %4750 = vmatpush3.bf16.msra.mxu0 %v5059_v46 }
 0x856   :  { %4763 = vmatprep.subr.bf16.mxu0 %v4874_v0 }
 0x8fb   :  { %v2320_v16 = vpop.f32.mrb[28].mxu1 }
 0x8fc   :  { %v4133_v18 = vpop.f32.mrb[29].mxu1 }
 0x90b   :  { %v2393_v21 = vpop.f32.mrb[36].mxu0  ;;  %v2465_v23 = vpop.f32.mrb[30].mxu1 }
 0x90c   :  { %v2394_v24 = vadd.f32 %v2393_v21, %v2320_v16  ;;  %v2469_v25 = vadd.f32 %v2465_v23, %v5128_v20  ;;  %v4152_v26 = vpop.f32.mrb[37].mxu0  ;;  %v4171_v28 = vpop.f32.mrb[31].mxu1 }
 0x90e   :  { %v2397_v30 = vadd.f32 %v5228_v62, %v2394_v24  ;;  %4860 = vtanh.f32 %v2469_v25 }
 0x910   :  { %4862 = vtanh.f32 %v2397_v30 }
 0x918   :  { %v4861_v32 = vpop.eup %4860 }
 0x919   :  { %4208 = vmatmul.mubr.msk.f32.vlgmr.msra.gmra.mrb[32].mxu1 %vm176_vm2, %v4861_v32 }
 0x91a   :  { %v4863_v33 = vpop.eup %4862  ;;  %4753 = vmatpush3.bf16.msra.mxu1 %v5152_v31  ;;  %4245 = vmatprep.mubr.msk.f32.mxu1 %vm4875_vm0, %v4876_v4 }
 0x91b   :  { %v2537_v36 = vpop.f32.mrb[38].mxu0  ;;  %4227 = vmatmul.mubr.msk.f32.vlgmr.msra.gmra.mrb[40].mxu0 %vm176_vm2, %v4863_v33  ;;  %4754 = vmatprep.subr.bf16.mxu1 %v4874_v0 }
 0x91c   :  { %v4190_v20 = vpop.f32.mrb[39].mxu0  ;;  %4765 = vmatpush3.bf16.msra.mxu0 %v4909_v5  ;;  %4264 = vmatprep.mubr.msk.f32.mxu0 %vm4875_vm0, %v4876_v4 }
 0x91d   :  { %4766 = vmatprep.subr.bf16.mxu0 %v4874_v0 }
 0x91e   :  { %4756 = vmatpush3.bf16.msra.mxu1 %v5162_v35 }
 0x91f   :  { %4757 = vmatprep.subr.bf16.mxu1 %v4874_v0 }
 0x920   :  { %4768 = vmatpush3.bf16.msra.mxu0 %v4921_v9 }
 0x921   :  { %4769 = vmatprep.subr.bf16.mxu0 %v4874_v0 }
 0x922   :  { %4759 = vmatpush3.bf16.msra.mxu1 %v5175_v41 }
 0x923   :  { %4760 = vmatprep.subr.bf16.mxu1 %v4874_v0 }
 0x924   :  { %4771 = vmatpush3.bf16.msra.mxu0 %v4954_v19 }
 0x925   :  { %4772 = vmatprep.subr.bf16.mxu0 %v4874_v0 }
 0x926   :  { %4762 = vmatpush3.bf16.msra.mxu1 %v5181_v44 }
 0x927   :  { %4775 = vmatprep.subr.bf16.mxu1 %v4874_v0 }
 0x928   :  { %4774 = vmatpush3.bf16.msra.mxu0 %v4982_v27 }
 0x929   :  { %4787 = vmatprep.subr.bf16.mxu0 %v4874_v0 }
 0x92b   :  { %4265 = vmatmul.mubr.msk.f32.vlgmr.msra.gmra.mrb[42].mxu0 %vm176_vm2, %v4861_v32 }
 0x92c   :  { %4789 = vmatpush3.bf16.msra.mxu0 %v5081_v49  ;;  %4302 = vmatprep.mubr.msk.f32.mxu0 %vm4875_vm0, %v4876_v4 }
 0x92d   :  { %4790 = vmatprep.subr.bf16.mxu0 %v4874_v0 }
 0x930   :  { %4792 = vmatpush3.bf16.msra.mxu0 %v5091_v52 }
 0x931   :  { %4793 = vmatprep.subr.bf16.mxu0 %v4874_v0 }
 0x934   :  { %4795 = vmatpush3.bf16.msra.mxu0 %v5101_v55 }
 0x935   :  { %4796 = vmatprep.subr.bf16.mxu0 %v4874_v0 }
 0x938   :  { %4798 = vmatpush3.bf16.msra.mxu0 %v5110_v58 }
 0x939   :  { %4811 = vmatprep.subr.bf16.mxu0 %v4874_v0 }
 0x9ec   :  { %v2610_v5 = vpop.f32.mrb[32].mxu1 }
 0x9ed   :  { %v2611_v9 = vadd.f32 %v2610_v5, %v2537_v36  ;;  %v4209_v19 = vpop.f32.mrb[33].mxu1 }
 0x9ee   :  { %v2685_v27 = vpop.f32.mrb[40].mxu0 }
 0x9ef   :  { %v2614_v49 = vadd.f32 %v5189_v45, %v2611_v9  ;;  %v4228_v38 = vpop.f32.mrb[41].mxu0 }
 0x9f1   :  { %4864 = vtanh.f32 %v2614_v49 }
 0x9fb   :  { %v4865_v39 = vpop.eup %4864 }
 0x9fc   :  { %4246 = vmatmul.mubr.msk.f32.vlgmr.msra.gmra.mrb[34].mxu1 %vm176_vm2, %v4865_v39 }
 0x9fd   :  { %4777 = vmatpush3.bf16.msra.mxu1 %v4941_v15  ;;  %4283 = vmatprep.mubr.msk.f32.mxu1 %vm4875_vm0, %v4876_v4 }
 0x9fe   :  { %v2830_v52 = vpop.f32.mrb[42].mxu0  ;;  %4778 = vmatprep.subr.bf16.mxu1 %v4874_v0 }
 0x9ff   :  { %v2834_v55 = vadd.f32 %v2830_v52, %v5126_v17  ;;  %v4266_v58 = vpop.f32.mrb[43].mxu0 }
 0xa01   :  { %4866 = vtanh.f32 %v2834_v55  ;;  %4780 = vmatpush3.bf16.msra.mxu1 %v4963_v22 }
 0xa02   :  { %4781 = vmatprep.subr.bf16.mxu1 %v4874_v0 }
 0xa05   :  { %4783 = vmatpush3.bf16.msra.mxu1 %v4988_v29 }
 0xa06   :  { %4784 = vmatprep.subr.bf16.mxu1 %v4874_v0 }
 0xa09   :  { %4786 = vmatpush3.bf16.msra.mxu1 %v5008_v34 }
 0xa0a   :  { %4799 = vmatprep.subr.bf16.mxu1 %v4874_v0 }
 0xa0b   :  { %v4867_v15 = vpop.eup %4866 }
 0xa0c   :  { %4284 = vmatmul.mubr.msk.f32.vlgmr.msra.gmra.mrb[36].mxu1 %vm176_vm2, %v4865_v39  ;;  %4303 = vmatmul.mubr.msk.f32.vlgmr.msra.gmra.mrb[44].mxu0 %vm176_vm2, %v4867_v15 }
 0xa0d   :  { %4801 = vmatpush3.bf16.msra.mxu1 %v5024_v37  ;;  %4321 = vmatprep.mubr.msk.f32.mxu1 %vm4875_vm0, %v4876_v4 }
 0xa0e   :  { %4802 = vmatprep.subr.bf16.mxu1 %v4874_v0  ;;  %4813 = vmatpush3.bf16.msra.mxu0 %v5152_v31 }
 0xa0f   :  { %4814 = vmatprep.subr.bf16.mxu0 %v4874_v0  ;;  %4340 = vmatprep.mubr.msk.f32.mxu0 %vm4875_vm0, %v4876_v4 }
 0xa11   :  { %4804 = vmatpush3.bf16.msra.mxu1 %v5037_v40 }
 0xa12   :  { %4805 = vmatprep.subr.bf16.mxu1 %v4874_v0  ;;  %4816 = vmatpush3.bf16.msra.mxu0 %v5162_v35 }
 0xa13   :  { %4817 = vmatprep.subr.bf16.mxu0 %v4874_v0 }
 0xa15   :  { %4807 = vmatpush3.bf16.msra.mxu1 %v5049_v43 }
 0xa16   :  { %4808 = vmatprep.subr.bf16.mxu1 %v4874_v0  ;;  %4819 = vmatpush3.bf16.msra.mxu0 %v5175_v41 }
 0xa17   :  { %4820 = vmatprep.subr.bf16.mxu0 %v4874_v0 }
 0xa19   :  { %4810 = vmatpush3.bf16.msra.mxu1 %v5059_v46 }
 0xa1a   :  { %4822 = vmatpush3.bf16.msra.mxu0 %v5181_v44 }
 0xacf   :  { %v2758_v4 = vpop.f32.mrb[34].mxu1 }
 0xad0   :  { %v2759_v22 = vadd.f32 %v2758_v4, %v2685_v27  ;;  %v4247_v29 = vpop.f32.mrb[35].mxu1 }
 0xad2   :  { %v2762_v34 = vadd.f32 %v5228_v62, %v2759_v22 }
 0xad4   :  { %4868 = vtanh.f32 %v2762_v34 }
 0xade   :  { %v4869_v37 = vpop.eup %4868 }
 0xadf   :  { %v2902_v40 = vpop.f32.mrb[36].mxu1  ;;  %v2975_v17 = vpop.f32.mrb[44].mxu0  ;;  %4322 = vmatmul.mubr.msk.f32.vlgmr.msra.gmra.mrb[38].mxu1 %vm176_vm2, %v4869_v37 }
 0xae0   :  { %v2976_v43 = vadd.f32 %v2975_v17, %v2902_v40  ;;  %v4285_v31 = vpop.f32.mrb[37].mxu1  ;;  %v4304_v35 = vpop.f32.mrb[45].mxu0 }
 0xae2   :  { %v2979_v0 = vadd.f32 %v5189_v45, %v2976_v43 }
 0xae4   :  { %4870 = vtanh.f32 %v2979_v0 }
 0xaee   :  { %v4871_v46 = vpop.eup %4870 }
 0xaef   :  { %4341 = vmatmul.mubr.msk.f32.vlgmr.msra.gmra.mrb[46].mxu0 %vm176_vm2, %v4871_v46 }
 0xbb2   :  { %v3050_v41 = vpop.f32.mrb[38].mxu1 }
 0xbb3   :  { %v4323_v44 = vpop.f32.mrb[39].mxu1 }
 0xbc2   :  { %v3123_v11 = vpop.f32.mrb[46].mxu0 }
 0xbc3   :  { %v3124_v3 = vadd.f32 %v3123_v11, %v3050_v41  ;;  %v4342_v42 = vpop.f32.mrb[47].mxu0 }
 0xbc5   :  { %v3127_v47 = vadd.f32 %v5228_v62, %v3124_v3 }
 0xbc7   :  { %4872 = vtanh.f32 %v3127_v47 }
 0xbd1   :  { %v4873_v50 = vpop.eup %4872 }
 0xbd2   :  { %v3135_v51 = vmul.f32 %v4873_v50, %v3198_v48 }
 0xbd4   :  { %v3136_v45 = vsel %vm176_vm2, %v3135_v51, 0.0 }
 0xbd5   :  { %3137 = vadd.xlane.f32.xlu0 %v3136_v45 }
 0xc62   :  { %v3138_v54 = vpop.xlane.xlu0 %3137 }
 0xc63   :  { %v3143_v56 = vadd.f32 %v3199_v53, %v3138_v54 }
 0xc65   :  { %3145 = vst.msk [vmem:[%s5595_s3] sm:$0xff] %vm3144_vm3, %v3143_v56 }

</bundles_post_ra>
